<compile_context>
chip_gen: v7x
topology: tpu7x:2x2x1
jax: 0.10.0
libtpu: 0.0.40
codegen_flags: <defaults>
</compile_context>

<pallas_src>
import functools

import jax
import jax.numpy as jnp
from jax.experimental import pallas as pl
from jax.experimental.pallas import tpu as pltpu


# ---------------------------------------------------------------------------
# small helpers
# ---------------------------------------------------------------------------
def _round_up(x, m):
    return (x + m - 1) // m * m


def _pad_layer_params(w_ih, w_hh, b_ih, b_hh, H, H_pad, din_pad):
    """Gate-aligned, zero-padded transposed weights.

    Returns:
      wih_pad : (din_pad, 4*H_pad)  W_ih^T, gate g in cols [g*H_pad, g*H_pad+H)
      whh_pad : (H_pad,   4*H_pad)  W_hh^T, same column layout, rows [0, H)
      b_pad   : (1, 4*H_pad)        b_ih + b_hh, same layout
    Padded gate columns have zero weight and zero bias, so padded hidden
    positions stay exactly zero through the whole recurrence.
    """
    din = w_ih.shape[1]
    wih_t = w_ih.T.astype(jnp.float32)           # (din, 4H)
    whh_t = w_hh.T.astype(jnp.float32)           # (H,   4H)
    b = (b_ih + b_hh).astype(jnp.float32)        # (4H,)

    wih_pad = jnp.zeros((din_pad, 4 * H_pad), jnp.float32)
    whh_pad = jnp.zeros((H_pad, 4 * H_pad), jnp.float32)
    b_pad = jnp.zeros((1, 4 * H_pad), jnp.float32)
    for g in range(4):
        c0 = g * H_pad
        wih_pad = wih_pad.at[:din, c0:c0 + H].set(wih_t[:, g * H:(g + 1) * H])
        whh_pad = whh_pad.at[:H, c0:c0 + H].set(whh_t[:, g * H:(g + 1) * H])
        b_pad = b_pad.at[0, c0:c0 + H].set(b[g * H:(g + 1) * H])
    return wih_pad, whh_pad, b_pad


def _pad_mask(m, B_pad, H_pad):
    out = jnp.zeros((B_pad, H_pad), jnp.float32)
    return out.at[:m.shape[0], :m.shape[1]].set(m.astype(jnp.float32))


# ---------------------------------------------------------------------------
# VMEM sizing (review: explicit budget + vmem_limit_bytes)
# ---------------------------------------------------------------------------
def _vmem_need_bytes(time_chunk, batch_tile, din_pad, h_pad, in_bytes, out_bytes,
                     apply_masks, single_buffer_weights):
    x_blk = 2 * time_chunk * batch_tile * din_pad * in_bytes       # double-buffered
    o_blk = 2 * time_chunk * batch_tile * h_pad * out_bytes        # double-buffered
    wbuf = 1 if single_buffer_weights else 2
    weights = ((din_pad + h_pad) * 4 * h_pad + 4 * h_pad) * 4 * wbuf
    msk = 3 * 2 * batch_tile * h_pad * 4 if apply_masks else 0
    scratch = 2 * batch_tile * h_pad * 4                           # h/c state
    return x_blk + o_blk + weights + msk + scratch


def _choose_time_chunk(T, batch_tile, din_pad, h_pad, in_bytes, out_bytes,
                       apply_masks, single_buffer_weights, budget_bytes):
    """Largest multiple-of-8 chunk (<=128, <=round_up(T,8)) fitting the budget."""
    cap = min(128, _round_up(T, 8))
    chunk = 8
    c = 8
    while c <= cap:
        if _vmem_need_bytes(c, batch_tile, din_pad, h_pad, in_bytes, out_bytes,
                            apply_masks, single_buffer_weights) <= budget_bytes:
            chunk = c
        c += 8
    return chunk


# ---------------------------------------------------------------------------
# the recurrent Pallas kernel (fused x@W_ih + h@W_hh per step)
# ---------------------------------------------------------------------------
def _make_lstm_kernel(h_pad, time_chunk, apply_masks):
    def kernel(x_ref, wih_ref, whh_ref, b_ref, *rest):
        if apply_masks:
            om_ref, hm_ref, cm_ref, out_ref, h_sc, c_sc = rest
        else:
            out_ref, h_sc, c_sc = rest
            om_ref = hm_ref = cm_ref = None

        # Reset recurrent state at the first time chunk of every batch tile.
        # Grid is (batch "parallel", time "arbitrary"): time chunks of one
        # batch tile run sequentially on one core, so VMEM scratch carries the
        # state correctly (also under megacore, each core has its own scratch).
        @pl.when(pl.program_id(1) == 0)
        def _():
            h_sc[...] = jnp.zeros_like(h_sc)
            c_sc[...] = jnp.zeros_like(c_sc)

        wih = wih_ref[...]        # (din_pad, 4*H_pad) f32, loop-invariant
        whh = whh_ref[...]        # (H_pad,   4*H_pad) f32, loop-invariant
        bias = b_ref[...]         # (1, 4*H_pad) f32
        if apply_masks:
            om = om_ref[...]
            hm = hm_ref[...]
            cm = cm_ref[...]

        def step(t, carry):
            h, c = carry                                   # f32 (batch_tile, H_pad)
            x_t = x_ref[t].astype(jnp.float32)             # streamed bf16/f32 input
            # Fused input + recurrent projection; f32 x f32 dots (MXU), f32 acc.
            gates = (jnp.dot(x_t, wih, preferred_element_type=jnp.float32)
                     + jnp.dot(h, whh, preferred_element_type=jnp.float32)
                     + bias)
            # 128-lane-aligned gate slices (each gate owns a full H_pad slab).
            i_g = jax.nn.sigmoid(gates[:, 0 * h_pad:1 * h_pad])
            f_g = jax.nn.sigmoid(gates[:, 1 * h_pad:2 * h_pad])
            g_g = jnp.tanh(gates[:, 2 * h_pad:3 * h_pad])
            o_g = jax.nn.sigmoid(gates[:, 3 * h_pad:4 * h_pad])

            c_new = f_g * c + i_g * g_g
            h_new = o_g * jnp.tanh(c_new)

            out_t = h_new * om if apply_masks else h_new
            out_ref[t] = out_t.astype(out_ref.dtype)

            h_next = h_new * hm if apply_masks else h_new
            c_next = c_new * cm if apply_masks else c_new
            return h_next, c_next

        # Partial unroll so loads/stores/EUP work overlap the serial h@W_hh chain.
        h_f, c_f = jax.lax.fori_loop(0, time_chunk, step,
                                     (h_sc[...], c_sc[...]),
                                     unroll=min(8, time_chunk))
        h_sc[...] = h_f
        c_sc[...] = c_f

    return kernel


def _resident_spec(shape, single_buffer):
    """BlockSpec for a loop-invariant operand (constant index map; optionally
    single-buffered so it does not cost 2x VMEM)."""
    index_map = lambda b, t: (0,) * len(shape)
    if single_buffer:
        try:
            return pl.BlockSpec(shape, index_map, pipeline_mode=pl.Buffered(1))
        except (TypeError, AttributeError):
            pass  # older JAX without pipeline_mode/Buffered: fall back
    return pl.BlockSpec(shape, index_map)


@functools.lru_cache(maxsize=None)
def _build_lstm_layer_call(T_pad, B_pad, din_pad, H_pad, time_chunk, batch_tile,
                           apply_masks, in_dtype_name, out_dtype_name,
                           single_buffer_weights, vmem_limit_bytes):
    del in_dtype_name  # input dtype comes from the operands at call time
    out_dtype = jnp.dtype(out_dtype_name)
    kernel = _make_lstm_kernel(H_pad, time_chunk, apply_masks)
    grid = (B_pad // batch_tile, T_pad // time_chunk)

    in_specs = [
        # streamed layer input, (time_chunk, batch_tile, din_pad) per block
        pl.BlockSpec((time_chunk, batch_tile, din_pad), lambda b, t: (t, b, 0)),
        # loop-invariant weights / bias, resident in VMEM
        _resident_spec((din_pad, 4 * H_pad), single_buffer_weights),
        _resident_spec((H_pad, 4 * H_pad), single_buffer_weights),
        _resident_spec((1, 4 * H_pad), single_buffer_weights),
    ]
    if apply_masks:
        in_specs += [pl.BlockSpec((batch_tile, H_pad), lambda b, t: (b, 0))
                     for _ in range(3)]

    return pl.pallas_call(
        kernel,
        out_shape=jax.ShapeDtypeStruct((T_pad, B_pad, H_pad), out_dtype),
        grid_spec=pltpu.PrefetchScalarGridSpec(
            num_scalar_prefetch=0,
            grid=grid,
            in_specs=in_specs,
            out_specs=pl.BlockSpec((time_chunk, batch_tile, H_pad),
                                   lambda b, t: (t, b, 0)),
            scratch_shapes=[
                pltpu.VMEM((batch_tile, H_pad), jnp.float32),   # h state
                pltpu.VMEM((batch_tile, H_pad), jnp.float32),   # c state
            ],
        ),
        compiler_params=pltpu.CompilerParams(
            # batch tiles are independent (megacore); time must stay the inner,
            # sequential ("arbitrary") axis for the recurrence/scratch carry.
            dimension_semantics=("parallel", "arbitrary"),
            vmem_limit_bytes=int(vmem_limit_bytes)),
    )


# ---------------------------------------------------------------------------
# public forward
# ---------------------------------------------------------------------------
def variational_lstm_forward(x, params, hidden_size, masks=None,
                             stream_dtype=jnp.bfloat16,
                             time_chunk=None, batch_tile=None,
                             vmem_budget_bytes=48 << 20,
                             single_buffer_weights=True):
    """x: (B, T, D) batch-major.  params: list of (w_ih, w_hh, b_ih, b_hh).
    masks: None (no dropout / eval) or list of (out_mask, h_mask, c_mask) per
    layer, each (B, H).  Returns (B, T, H) float32.

    stream_dtype controls only the HBM streaming dtype of the layer
    activations; all matmuls and gate math run in f32."""
    B, T, D = x.shape
    H = hidden_size
    H_pad = _round_up(H, 128)                      # lane-aligned hidden size
    stream_dtype = jnp.dtype(stream_dtype)
    sub = 16 if stream_dtype == jnp.dtype(jnp.bfloat16) else 8
    B_pad = _round_up(B, sub)                      # sublane-aligned batch

    apply_masks = masks is not None
    n_layers = len(params)
    din0_pad = _round_up(D, 128)
    max_din_pad = max(din0_pad, H_pad) if n_layers > 1 else din0_pad

    # batch tile: give the "parallel" grid axis extent >= 2 when the batch
    # allows it (v7x megacore); otherwise keep one full tile (max MXU M-fill).
    if batch_tile is None:
        half = B_pad // 2
        batch_tile = half if (B_pad >= 16 and half % 8 == 0) else B_pad
    assert B_pad % batch_tile == 0 and batch_tile % 8 == 0

    in_bytes = stream_dtype.itemsize
    if time_chunk is None:
        time_chunk = _choose_time_chunk(T, batch_tile, max_din_pad, H_pad,
                                        in_bytes, 4, apply_masks,
                                        single_buffer_weights, vmem_budget_bytes)
    T_pad = _round_up(T, time_chunk)               # pad time; drop tail at the end

    # Layer-0 input: time-major, zero-padded, streamed in stream_dtype.
    x_tm = jnp.zeros((T_pad, B_pad, din0_pad), jnp.float32)
    x_tm = x_tm.at[:T, :B, :D].set(jnp.transpose(x.astype(jnp.float32), (1, 0, 2)))
    act = x_tm.astype(stream_dtype)

    for l, (w_ih, w_hh, b_ih, b_hh) in enumerate(params):
        din_pad = din0_pad if l == 0 else H_pad
        wih_pad, whh_pad, b_pad = _pad_layer_params(
            w_ih, w_hh, b_ih, b_hh, H, H_pad, din_pad)

        last = (l == n_layers - 1)
        out_dtype = jnp.float32 if last else stream_dtype

        need = _vmem_need_bytes(time_chunk, batch_tile, din_pad, H_pad,
                                jnp.dtype(act.dtype).itemsize,
                                jnp.dtype(out_dtype).itemsize,
                                apply_masks, single_buffer_weights)
        vmem_limit = min(max(need + max(need // 4, 2 << 20), 32 << 20), 100 << 20)

        call = _build_lstm_layer_call(
            T_pad, B_pad, din_pad, H_pad, time_chunk, batch_tile, apply_masks,
            jnp.dtype(act.dtype).name, jnp.dtype(out_dtype).name,
            bool(single_buffer_weights), int(vmem_limit))

        if apply_masks:
            om, hm, cm = (_pad_mask(m, B_pad, H_pad) for m in masks[l])
            act = call(act, wih_pad, whh_pad, b_pad, om, hm, cm)
        else:
            act = call(act, wih_pad, whh_pad, b_pad)

    out = act[:T, :B, :H]                          # strip time/batch/hidden padding
    return jnp.transpose(out, (1, 0, 2))           # (B, T, H), float32


# ---------------------------------------------------------------------------
# Pure-JAX reference (mirrors the PyTorch forward) for correctness checking.
# ---------------------------------------------------------------------------
def _reference_forward(x, params, masks, hidden_size):
    B = x.shape[0]
    for (w_ih, w_hh, b_ih, b_hh), (om, hm, cm) in zip(params, masks):
        hx = jnp.zeros((B, hidden_size), x.dtype)
        cx = jnp.zeros((B, hidden_size), x.dtype)
        outs = []
        for t in range(x.shape[1]):
            gates = x[:, t, :] @ w_ih.T + b_ih + hx @ w_hh.T + b_hh
            i, f, g, o = jnp.split(gates, 4, axis=-1)
            i, f, g, o = jax.nn.sigmoid(i), jax.nn.sigmoid(f), jnp.tanh(g), jax.nn.sigmoid(o)
            cx = f * cx + i * g
            hx = o * jnp.tanh(cx)
            outs.append(hx * om)
            hx, cx = hx * hm, cx * cm
        x = jnp.stack(outs, axis=1)
    return x


def _init_params(key, input_size, hidden_size, num_layer):
    """nn.LSTMCell-shaped params, U(-1/sqrt(H), 1/sqrt(H))."""
    params = []
    k = 1.0 / jnp.sqrt(hidden_size)
    din = input_size
    for _ in range(num_layer):
        key, k1, k2, k3, k4 = jax.random.split(key, 5)
        w_ih = jax.random.uniform(k1, (4 * hidden_size, din), jnp.float32, -k, k)
        w_hh = jax.random.uniform(k2, (4 * hidden_size, hidden_size), jnp.float32, -k, k)
        b_ih = jax.random.uniform(k3, (4 * hidden_size,), jnp.float32, -k, k)
        b_hh = jax.random.uniform(k4, (4 * hidden_size,), jnp.float32, -k, k)
        params.append((w_ih, w_hh, b_ih, b_hh))
        din = hidden_size
    return params, key


def _init_masks(key, batch, hidden_size, num_layer, dropout_rate):
    """Variational dropout masks sampled ONCE per layer (as in the torch module)."""
    keep = 1.0 - dropout_rate
    masks = []
    for _ in range(num_layer):
        layer = []
        for _ in range(3):   # out_dropout, h_dropout, c_dropout
            key, sub = jax.random.split(key)
            m = jax.random.bernoulli(sub, keep, (batch, hidden_size)).astype(jnp.float32) / keep
            layer.append(m)
        masks.append(tuple(layer))
    return masks, key


if __name__ == "__main__":
    B, T, INPUT_SIZE, HIDDEN = 2, 8, 4, 32
    NUM_LAYER = 2

    key = jax.random.PRNGKey(0)
    key, xkey = jax.random.split(key)
    x = jax.random.normal(xkey, (B, T, INPUT_SIZE), jnp.float32)
    params, key = _init_params(key, INPUT_SIZE, HIDDEN, NUM_LAYER)

    ones_masks = [(jnp.ones((B, HIDDEN), jnp.float32),) * 3 for _ in range(NUM_LAYER)]
    ref = _reference_forward(x, params, ones_masks, HIDDEN)

    # 1) f32 streaming, dropout disabled (module default / eval) — tight check.
    out = variational_lstm_forward(x, params, HIDDEN, masks=None,
                                   stream_dtype=jnp.float32)
    out = jax.block_until_ready(out)
    assert out.shape == (B, T, HIDDEN)
    assert jnp.allclose(out, ref, atol=1e-4, rtol=1e-4), "f32 mismatch vs reference"

    # 2) bf16 activation streaming (matmuls & gate math stay f32) — loose check.
    out_bf16 = variational_lstm_forward(x, params, HIDDEN, masks=None,
                                        stream_dtype=jnp.bfloat16)
    out_bf16 = jax.block_until_ready(out_bf16)
    assert jnp.allclose(out_bf16, ref, atol=5e-2, rtol=5e-2), "bf16 mismatch vs reference"

    # 3) training-mode variational dropout (rate 0.25), same masks both sides.
    masks, key = _init_masks(key, B, HIDDEN, NUM_LAYER, 0.25)
    out_dp = variational_lstm_forward(x, params, HIDDEN, masks=masks,
                                      stream_dtype=jnp.float32)
    out_dp = jax.block_until_ready(out_dp)
    ref_dp = _reference_forward(x, params, masks, HIDDEN)
    assert jnp.allclose(out_dp, ref_dp, atol=1e-4, rtol=1e-4), "dropout mismatch vs reference"

    print("KERNEL_OK")
</pallas_src>

<mosaic_0001>
module attributes {stable_mosaic.version = 11 : i64} {
  func.func @kernel(%arg0: i32, %arg1: i32, %arg2: memref<8x8x128xf32, #tpu.memory_space<vmem>>, %arg3: memref<128x512xf32, #tpu.memory_space<vmem>>, %arg4: memref<128x512xf32, #tpu.memory_space<vmem>>, %arg5: memref<1x512xf32, #tpu.memory_space<vmem>>, %arg6: memref<8x8x128xf32, #tpu.memory_space<vmem>>, %arg7: memref<8x128xf32, #tpu.memory_space<vmem>>, %arg8: memref<8x128xf32, #tpu.memory_space<vmem>>) attributes {dimension_semantics = [#tpu.dimension_semantics<parallel>, #tpu.dimension_semantics<arbitrary>], iteration_bounds = array<i64: 1, 1>, scalar_prefetch = 0 : i64, scratch_operands = 2 : i64, tpu.core_type = #tpu.core_type<tc>, window_params = [{transform_indices = @transform_0, window_bounds = array<i64: 8, 8, 128>}, {pipeline_mode = #tpu.pipeline_mode<synchronous>, transform_indices = @transform_1, window_bounds = array<i64: 128, 512>}, {pipeline_mode = #tpu.pipeline_mode<synchronous>, transform_indices = @transform_2, window_bounds = array<i64: 128, 512>}, {pipeline_mode = #tpu.pipeline_mode<synchronous>, transform_indices = @transform_3, window_bounds = array<i64: 1, 512>}, {transform_indices = @transform_4, window_bounds = array<i64: 8, 8, 128>}]} {
    %c0_i32 = arith.constant 0 : i32
    %0 = arith.cmpi eq, %arg1, %c0_i32 : i32
    %1 = arith.extui %0 : i1 to i32
    %c0_i32_0 = arith.constant 0 : i32
    %2 = arith.cmpi ne, %1, %c0_i32_0 : i32
    scf.if %2 {
      %cst_86 = arith.constant 0.000000e+00 : f32
      %306 = vector.broadcast %cst_86 : f32 to vector<8x128xf32>
      %c0_87 = arith.constant 0 : index
      %c0_88 = arith.constant 0 : index
      %307 = vector.load %arg7[%c0_87, %c0_88] : memref<8x128xf32, #tpu.memory_space<vmem>>, vector<8x128xf32>
      tpu.vector_store %arg7[%c0_87, %c0_88], %306 {strides = array<i32>} : memref<8x128xf32, #tpu.memory_space<vmem>>, vector<8x128xf32>,
      %cst_89 = arith.constant 0.000000e+00 : f32
      %308 = vector.broadcast %cst_89 : f32 to vector<8x128xf32>
      %c0_90 = arith.constant 0 : index
      %c0_91 = arith.constant 0 : index
      %309 = vector.load %arg8[%c0_90, %c0_91] : memref<8x128xf32, #tpu.memory_space<vmem>>, vector<8x128xf32>
      tpu.vector_store %arg8[%c0_90, %c0_91], %308 {strides = array<i32>} : memref<8x128xf32, #tpu.memory_space<vmem>>, vector<8x128xf32>,
    } else {
    }
    %c0 = arith.constant 0 : index
    %c0_1 = arith.constant 0 : index
    %3 = vector.load %arg3[%c0, %c0_1] : memref<128x512xf32, #tpu.memory_space<vmem>>, vector<128x512xf32>
    %c0_2 = arith.constant 0 : index
    %c0_3 = arith.constant 0 : index
    %4 = vector.load %arg4[%c0_2, %c0_3] : memref<128x512xf32, #tpu.memory_space<vmem>>, vector<128x512xf32>
    %c0_4 = arith.constant 0 : index
    %c0_5 = arith.constant 0 : index
    %5 = vector.load %arg5[%c0_4, %c0_5] : memref<1x512xf32, #tpu.memory_space<vmem>>, vector<1x512xf32>
    %c0_6 = arith.constant 0 : index
    %c0_7 = arith.constant 0 : index
    %6 = vector.load %arg7[%c0_6, %c0_7] : memref<8x128xf32, #tpu.memory_space<vmem>>, vector<8x128xf32>
    %c0_8 = arith.constant 0 : index
    %c0_9 = arith.constant 0 : index
    %7 = vector.load %arg8[%c0_8, %c0_9] : memref<8x128xf32, #tpu.memory_space<vmem>>, vector<8x128xf32>
    %c0_i32_10 = arith.constant 0 : i32
    %8 = arith.index_cast %c0_i32_10 : i32 to index
    %c0_11 = arith.constant 0 : index
    %c0_12 = arith.constant 0 : index
    %9 = vector.load %arg2[%8, %c0_11, %c0_12] : memref<8x8x128xf32, #tpu.memory_space<vmem>>, vector<1x8x128xf32>
    %10 = vector.shape_cast %9 : vector<1x8x128xf32> to vector<8x128xf32>
    %cst = arith.constant dense<0.000000e+00> : vector<8x512xf32>
    %11 = tpu.matmul %10, %3, %cst {dimension_numbers = #tpu.dot_dimension_numbers<[1], [0], [0], [1], [0, 0, 1, 1], [], []>} : vector<8x128xf32>, vector<128x512xf32>, vector<8x512xf32> -> vector<8x512xf32>
    %cst_13 = arith.constant dense<0.000000e+00> : vector<8x512xf32>
    %12 = tpu.matmul %6, %4, %cst_13 {dimension_numbers = #tpu.dot_dimension_numbers<[1], [0], [0], [1], [0, 0, 1, 1], [], []>} : vector<8x128xf32>, vector<128x512xf32>, vector<8x512xf32> -> vector<8x512xf32>
    %13 = arith.addf %11, %12 : vector<8x512xf32>
    %14 = vector.broadcast %5 : vector<1x512xf32> to vector<8x512xf32>
    %15 = arith.addf %13, %14 : vector<8x512xf32>
    %16 = vector.extract_strided_slice %15 {offsets = [0, 0], sizes = [8, 128], strides = [1, 1]} : vector<8x512xf32> to vector<8x128xf32>
    %17 = arith.negf %16 : vector<8x128xf32>
    %18 = math.exp %17 : vector<8x128xf32>
    %cst_14 = arith.constant 1.000000e+00 : f32
    %19 = vector.broadcast %cst_14 : f32 to vector<8x128xf32>
    %20 = arith.addf %19, %18 : vector<8x128xf32>
    %21 = arith.divf %19, %20 : vector<8x128xf32>
    %22 = vector.extract_strided_slice %15 {offsets = [0, 128], sizes = [8, 128], strides = [1, 1]} : vector<8x512xf32> to vector<8x128xf32>
    %23 = arith.negf %22 : vector<8x128xf32>
    %24 = math.exp %23 : vector<8x128xf32>
    %cst_15 = arith.constant 1.000000e+00 : f32
    %25 = vector.broadcast %cst_15 : f32 to vector<8x128xf32>
    %26 = arith.addf %25, %24 : vector<8x128xf32>
    %27 = arith.divf %25, %26 : vector<8x128xf32>
    %28 = vector.extract_strided_slice %15 {offsets = [0, 256], sizes = [8, 128], strides = [1, 1]} : vector<8x512xf32> to vector<8x128xf32>
    %29 = math.tanh %28 : vector<8x128xf32>
    %30 = vector.extract_strided_slice %15 {offsets = [0, 384], sizes = [8, 128], strides = [1, 1]} : vector<8x512xf32> to vector<8x128xf32>
    %31 = arith.negf %30 : vector<8x128xf32>
    %32 = math.exp %31 : vector<8x128xf32>
    %cst_16 = arith.constant 1.000000e+00 : f32
    %33 = vector.broadcast %cst_16 : f32 to vector<8x128xf32>
    %34 = arith.addf %33, %32 : vector<8x128xf32>
    %35 = arith.divf %33, %34 : vector<8x128xf32>
    %36 = arith.mulf %27, %7 : vector<8x128xf32>
    %37 = arith.mulf %21, %29 : vector<8x128xf32>
    %38 = arith.addf %36, %37 : vector<8x128xf32>
    %39 = math.tanh %38 : vector<8x128xf32>
    %40 = arith.mulf %35, %39 : vector<8x128xf32>
    %41 = arith.index_cast %c0_i32_10 : i32 to index
    %c0_17 = arith.constant 0 : index
    %c0_18 = arith.constant 0 : index
    %42 = vector.load %arg6[%41, %c0_17, %c0_18] : memref<8x8x128xf32, #tpu.memory_space<vmem>>, vector<1x8x128xf32>
    %43 = vector.shape_cast %42 : vector<1x8x128xf32> to vector<8x128xf32>
    %44 = vector.shape_cast %40 : vector<8x128xf32> to vector<1x8x128xf32>
    tpu.vector_store %arg6[%41, %c0_17, %c0_18], %44 {strides = array<i32>} : memref<8x8x128xf32, #tpu.memory_space<vmem>>, vector<1x8x128xf32>,
    %c1_i32 = arith.constant 1 : i32
    %45 = arith.index_cast %c1_i32 : i32 to index
    %c0_19 = arith.constant 0 : index
    %c0_20 = arith.constant 0 : index
    %46 = vector.load %arg2[%45, %c0_19, %c0_20] : memref<8x8x128xf32, #tpu.memory_space<vmem>>, vector<1x8x128xf32>
    %47 = vector.shape_cast %46 : vector<1x8x128xf32> to vector<8x128xf32>
    %cst_21 = arith.constant dense<0.000000e+00> : vector<8x512xf32>
    %48 = tpu.matmul %47, %3, %cst_21 {dimension_numbers = #tpu.dot_dimension_numbers<[1], [0], [0], [1], [0, 0, 1, 1], [], []>} : vector<8x128xf32>, vector<128x512xf32>, vector<8x512xf32> -> vector<8x512xf32>
    %cst_22 = arith.constant dense<0.000000e+00> : vector<8x512xf32>
    %49 = tpu.matmul %40, %4, %cst_22 {dimension_numbers = #tpu.dot_dimension_numbers<[1], [0], [0], [1], [0, 0, 1, 1], [], []>} : vector<8x128xf32>, vector<128x512xf32>, vector<8x512xf32> -> vector<8x512xf32>
    %50 = arith.addf %48, %49 : vector<8x512xf32>
    %51 = vector.broadcast %5 : vector<1x512xf32> to vector<8x512xf32>
    %52 = arith.addf %50, %51 : vector<8x512xf32>
    %53 = vector.extract_strided_slice %52 {offsets = [0, 0], sizes = [8, 128], strides = [1, 1]} : vector<8x512xf32> to vector<8x128xf32>
    %54 = arith.negf %53 : vector<8x128xf32>
    %55 = math.exp %54 : vector<8x128xf32>
    %cst_23 = arith.constant 1.000000e+00 : f32
    %56 = vector.broadcast %cst_23 : f32 to vector<8x128xf32>
    %57 = arith.addf %56, %55 : vector<8x128xf32>
    %58 = arith.divf %56, %57 : vector<8x128xf32>
    %59 = vector.extract_strided_slice %52 {offsets = [0, 128], sizes = [8, 128], strides = [1, 1]} : vector<8x512xf32> to vector<8x128xf32>
    %60 = arith.negf %59 : vector<8x128xf32>
    %61 = math.exp %60 : vector<8x128xf32>
    %cst_24 = arith.constant 1.000000e+00 : f32
    %62 = vector.broadcast %cst_24 : f32 to vector<8x128xf32>
    %63 = arith.addf %62, %61 : vector<8x128xf32>
    %64 = arith.divf %62, %63 : vector<8x128xf32>
    %65 = vector.extract_strided_slice %52 {offsets = [0, 256], sizes = [8, 128], strides = [1, 1]} : vector<8x512xf32> to vector<8x128xf32>
    %66 = math.tanh %65 : vector<8x128xf32>
    %67 = vector.extract_strided_slice %52 {offsets = [0, 384], sizes = [8, 128], strides = [1, 1]} : vector<8x512xf32> to vector<8x128xf32>
    %68 = arith.negf %67 : vector<8x128xf32>
    %69 = math.exp %68 : vector<8x128xf32>
    %cst_25 = arith.constant 1.000000e+00 : f32
    %70 = vector.broadcast %cst_25 : f32 to vector<8x128xf32>
    %71 = arith.addf %70, %69 : vector<8x128xf32>
    %72 = arith.divf %70, %71 : vector<8x128xf32>
    %73 = arith.mulf %64, %38 : vector<8x128xf32>
    %74 = arith.mulf %58, %66 : vector<8x128xf32>
    %75 = arith.addf %73, %74 : vector<8x128xf32>
    %76 = math.tanh %75 : vector<8x128xf32>
    %77 = arith.mulf %72, %76 : vector<8x128xf32>
    %78 = arith.index_cast %c1_i32 : i32 to index
    %c0_26 = arith.constant 0 : index
    %c0_27 = arith.constant 0 : index
    %79 = vector.load %arg6[%78, %c0_26, %c0_27] : memref<8x8x128xf32, #tpu.memory_space<vmem>>, vector<1x8x128xf32>
    %80 = vector.shape_cast %79 : vector<1x8x128xf32> to vector<8x128xf32>
    %81 = vector.shape_cast %77 : vector<8x128xf32> to vector<1x8x128xf32>
    tpu.vector_store %arg6[%78, %c0_26, %c0_27], %81 {strides = array<i32>} : memref<8x8x128xf32, #tpu.memory_space<vmem>>, vector<1x8x128xf32>,
    %c2_i32 = arith.constant 2 : i32
    %82 = arith.index_cast %c2_i32 : i32 to index
    %c0_28 = arith.constant 0 : index
    %c0_29 = arith.constant 0 : index
    %83 = vector.load %arg2[%82, %c0_28, %c0_29] : memref<8x8x128xf32, #tpu.memory_space<vmem>>, vector<1x8x128xf32>
    %84 = vector.shape_cast %83 : vector<1x8x128xf32> to vector<8x128xf32>
    %cst_30 = arith.constant dense<0.000000e+00> : vector<8x512xf32>
    %85 = tpu.matmul %84, %3, %cst_30 {dimension_numbers = #tpu.dot_dimension_numbers<[1], [0], [0], [1], [0, 0, 1, 1], [], []>} : vector<8x128xf32>, vector<128x512xf32>, vector<8x512xf32> -> vector<8x512xf32>
    %cst_31 = arith.constant dense<0.000000e+00> : vector<8x512xf32>
    %86 = tpu.matmul %77, %4, %cst_31 {dimension_numbers = #tpu.dot_dimension_numbers<[1], [0], [0], [1], [0, 0, 1, 1], [], []>} : vector<8x128xf32>, vector<128x512xf32>, vector<8x512xf32> -> vector<8x512xf32>
    %87 = arith.addf %85, %86 : vector<8x512xf32>
    %88 = vector.broadcast %5 : vector<1x512xf32> to vector<8x512xf32>
    %89 = arith.addf %87, %88 : vector<8x512xf32>
    %90 = vector.extract_strided_slice %89 {offsets = [0, 0], sizes = [8, 128], strides = [1, 1]} : vector<8x512xf32> to vector<8x128xf32>
    %91 = arith.negf %90 : vector<8x128xf32>
    %92 = math.exp %91 : vector<8x128xf32>
    %cst_32 = arith.constant 1.000000e+00 : f32
    %93 = vector.broadcast %cst_32 : f32 to vector<8x128xf32>
    %94 = arith.addf %93, %92 : vector<8x128xf32>
    %95 = arith.divf %93, %94 : vector<8x128xf32>
    %96 = vector.extract_strided_slice %89 {offsets = [0, 128], sizes = [8, 128], strides = [1, 1]} : vector<8x512xf32> to vector<8x128xf32>
    %97 = arith.negf %96 : vector<8x128xf32>
    %98 = math.exp %97 : vector<8x128xf32>
    %cst_33 = arith.constant 1.000000e+00 : f32
    %99 = vector.broadcast %cst_33 : f32 to vector<8x128xf32>
    %100 = arith.addf %99, %98 : vector<8x128xf32>
    %101 = arith.divf %99, %100 : vector<8x128xf32>
    %102 = vector.extract_strided_slice %89 {offsets = [0, 256], sizes = [8, 128], strides = [1, 1]} : vector<8x512xf32> to vector<8x128xf32>
    %103 = math.tanh %102 : vector<8x128xf32>
    %104 = vector.extract_strided_slice %89 {offsets = [0, 384], sizes = [8, 128], strides = [1, 1]} : vector<8x512xf32> to vector<8x128xf32>
    %105 = arith.negf %104 : vector<8x128xf32>
    %106 = math.exp %105 : vector<8x128xf32>
    %cst_34 = arith.constant 1.000000e+00 : f32
    %107 = vector.broadcast %cst_34 : f32 to vector<8x128xf32>
    %108 = arith.addf %107, %106 : vector<8x128xf32>
    %109 = arith.divf %107, %108 : vector<8x128xf32>
    %110 = arith.mulf %101, %75 : vector<8x128xf32>
    %111 = arith.mulf %95, %103 : vector<8x128xf32>
    %112 = arith.addf %110, %111 : vector<8x128xf32>
    %113 = math.tanh %112 : vector<8x128xf32>
    %114 = arith.mulf %109, %113 : vector<8x128xf32>
    %115 = arith.index_cast %c2_i32 : i32 to index
    %c0_35 = arith.constant 0 : index
    %c0_36 = arith.constant 0 : index
    %116 = vector.load %arg6[%115, %c0_35, %c0_36] : memref<8x8x128xf32, #tpu.memory_space<vmem>>, vector<1x8x128xf32>
    %117 = vector.shape_cast %116 : vector<1x8x128xf32> to vector<8x128xf32>
    %118 = vector.shape_cast %114 : vector<8x128xf32> to vector<1x8x128xf32>
    tpu.vector_store %arg6[%115, %c0_35, %c0_36], %118 {strides = array<i32>} : memref<8x8x128xf32, #tpu.memory_space<vmem>>, vector<1x8x128xf32>,
    %c3_i32 = arith.constant 3 : i32
    %119 = arith.index_cast %c3_i32 : i32 to index
    %c0_37 = arith.constant 0 : index
    %c0_38 = arith.constant 0 : index
    %120 = vector.load %arg2[%119, %c0_37, %c0_38] : memref<8x8x128xf32, #tpu.memory_space<vmem>>, vector<1x8x128xf32>
    %121 = vector.shape_cast %120 : vector<1x8x128xf32> to vector<8x128xf32>
    %cst_39 = arith.constant dense<0.000000e+00> : vector<8x512xf32>
    %122 = tpu.matmul %121, %3, %cst_39 {dimension_numbers = #tpu.dot_dimension_numbers<[1], [0], [0], [1], [0, 0, 1, 1], [], []>} : vector<8x128xf32>, vector<128x512xf32>, vector<8x512xf32> -> vector<8x512xf32>
    %cst_40 = arith.constant dense<0.000000e+00> : vector<8x512xf32>
    %123 = tpu.matmul %114, %4, %cst_40 {dimension_numbers = #tpu.dot_dimension_numbers<[1], [0], [0], [1], [0, 0, 1, 1], [], []>} : vector<8x128xf32>, vector<128x512xf32>, vector<8x512xf32> -> vector<8x512xf32>
    %124 = arith.addf %122, %123 : vector<8x512xf32>
    %125 = vector.broadcast %5 : vector<1x512xf32> to vector<8x512xf32>
    %126 = arith.addf %124, %125 : vector<8x512xf32>
    %127 = vector.extract_strided_slice %126 {offsets = [0, 0], sizes = [8, 128], strides = [1, 1]} : vector<8x512xf32> to vector<8x128xf32>
    %128 = arith.negf %127 : vector<8x128xf32>
    %129 = math.exp %128 : vector<8x128xf32>
    %cst_41 = arith.constant 1.000000e+00 : f32
    %130 = vector.broadcast %cst_41 : f32 to vector<8x128xf32>
    %131 = arith.addf %130, %129 : vector<8x128xf32>
    %132 = arith.divf %130, %131 : vector<8x128xf32>
    %133 = vector.extract_strided_slice %126 {offsets = [0, 128], sizes = [8, 128], strides = [1, 1]} : vector<8x512xf32> to vector<8x128xf32>
    %134 = arith.negf %133 : vector<8x128xf32>
    %135 = math.exp %134 : vector<8x128xf32>
    %cst_42 = arith.constant 1.000000e+00 : f32
    %136 = vector.broadcast %cst_42 : f32 to vector<8x128xf32>
    %137 = arith.addf %136, %135 : vector<8x128xf32>
    %138 = arith.divf %136, %137 : vector<8x128xf32>
    %139 = vector.extract_strided_slice %126 {offsets = [0, 256], sizes = [8, 128], strides = [1, 1]} : vector<8x512xf32> to vector<8x128xf32>
    %140 = math.tanh %139 : vector<8x128xf32>
    %141 = vector.extract_strided_slice %126 {offsets = [0, 384], sizes = [8, 128], strides = [1, 1]} : vector<8x512xf32> to vector<8x128xf32>
    %142 = arith.negf %141 : vector<8x128xf32>
    %143 = math.exp %142 : vector<8x128xf32>
    %cst_43 = arith.constant 1.000000e+00 : f32
    %144 = vector.broadcast %cst_43 : f32 to vector<8x128xf32>
    %145 = arith.addf %144, %143 : vector<8x128xf32>
    %146 = arith.divf %144, %145 : vector<8x128xf32>
    %147 = arith.mulf %138, %112 : vector<8x128xf32>
    %148 = arith.mulf %132, %140 : vector<8x128xf32>
    %149 = arith.addf %147, %148 : vector<8x128xf32>
    %150 = math.tanh %149 : vector<8x128xf32>
    %151 = arith.mulf %146, %150 : vector<8x128xf32>
    %152 = arith.index_cast %c3_i32 : i32 to index
    %c0_44 = arith.constant 0 : index
    %c0_45 = arith.constant 0 : index
    %153 = vector.load %arg6[%152, %c0_44, %c0_45] : memref<8x8x128xf32, #tpu.memory_space<vmem>>, vector<1x8x128xf32>
    %154 = vector.shape_cast %153 : vector<1x8x128xf32> to vector<8x128xf32>
    %155 = vector.shape_cast %151 : vector<8x128xf32> to vector<1x8x128xf32>
    tpu.vector_store %arg6[%152, %c0_44, %c0_45], %155 {strides = array<i32>} : memref<8x8x128xf32, #tpu.memory_space<vmem>>, vector<1x8x128xf32>,
    %c4_i32 = arith.constant 4 : i32
    %156 = arith.index_cast %c4_i32 : i32 to index
    %c0_46 = arith.constant 0 : index
    %c0_47 = arith.constant 0 : index
    %157 = vector.load %arg2[%156, %c0_46, %c0_47] : memref<8x8x128xf32, #tpu.memory_space<vmem>>, vector<1x8x128xf32>
    %158 = vector.shape_cast %157 : vector<1x8x128xf32> to vector<8x128xf32>
    %cst_48 = arith.constant dense<0.000000e+00> : vector<8x512xf32>
    %159 = tpu.matmul %158, %3, %cst_48 {dimension_numbers = #tpu.dot_dimension_numbers<[1], [0], [0], [1], [0, 0, 1, 1], [], []>} : vector<8x128xf32>, vector<128x512xf32>, vector<8x512xf32> -> vector<8x512xf32>
    %cst_49 = arith.constant dense<0.000000e+00> : vector<8x512xf32>
    %160 = tpu.matmul %151, %4, %cst_49 {dimension_numbers = #tpu.dot_dimension_numbers<[1], [0], [0], [1], [0, 0, 1, 1], [], []>} : vector<8x128xf32>, vector<128x512xf32>, vector<8x512xf32> -> vector<8x512xf32>
    %161 = arith.addf %159, %160 : vector<8x512xf32>
    %162 = vector.broadcast %5 : vector<1x512xf32> to vector<8x512xf32>
    %163 = arith.addf %161, %162 : vector<8x512xf32>
    %164 = vector.extract_strided_slice %163 {offsets = [0, 0], sizes = [8, 128], strides = [1, 1]} : vector<8x512xf32> to vector<8x128xf32>
    %165 = arith.negf %164 : vector<8x128xf32>
    %166 = math.exp %165 : vector<8x128xf32>
    %cst_50 = arith.constant 1.000000e+00 : f32
    %167 = vector.broadcast %cst_50 : f32 to vector<8x128xf32>
    %168 = arith.addf %167, %166 : vector<8x128xf32>
    %169 = arith.divf %167, %168 : vector<8x128xf32>
    %170 = vector.extract_strided_slice %163 {offsets = [0, 128], sizes = [8, 128], strides = [1, 1]} : vector<8x512xf32> to vector<8x128xf32>
    %171 = arith.negf %170 : vector<8x128xf32>
    %172 = math.exp %171 : vector<8x128xf32>
    %cst_51 = arith.constant 1.000000e+00 : f32
    %173 = vector.broadcast %cst_51 : f32 to vector<8x128xf32>
    %174 = arith.addf %173, %172 : vector<8x128xf32>
    %175 = arith.divf %173, %174 : vector<8x128xf32>
    %176 = vector.extract_strided_slice %163 {offsets = [0, 256], sizes = [8, 128], strides = [1, 1]} : vector<8x512xf32> to vector<8x128xf32>
    %177 = math.tanh %176 : vector<8x128xf32>
    %178 = vector.extract_strided_slice %163 {offsets = [0, 384], sizes = [8, 128], strides = [1, 1]} : vector<8x512xf32> to vector<8x128xf32>
    %179 = arith.negf %178 : vector<8x128xf32>
    %180 = math.exp %179 : vector<8x128xf32>
    %cst_52 = arith.constant 1.000000e+00 : f32
    %181 = vector.broadcast %cst_52 : f32 to vector<8x128xf32>
    %182 = arith.addf %181, %180 : vector<8x128xf32>
    %183 = arith.divf %181, %182 : vector<8x128xf32>
    %184 = arith.mulf %175, %149 : vector<8x128xf32>
    %185 = arith.mulf %169, %177 : vector<8x128xf32>
    %186 = arith.addf %184, %185 : vector<8x128xf32>
    %187 = math.tanh %186 : vector<8x128xf32>
    %188 = arith.mulf %183, %187 : vector<8x128xf32>
    %189 = arith.index_cast %c4_i32 : i32 to index
    %c0_53 = arith.constant 0 : index
    %c0_54 = arith.constant 0 : index
    %190 = vector.load %arg6[%189, %c0_53, %c0_54] : memref<8x8x128xf32, #tpu.memory_space<vmem>>, vector<1x8x128xf32>
    %191 = vector.shape_cast %190 : vector<1x8x128xf32> to vector<8x128xf32>
    %192 = vector.shape_cast %188 : vector<8x128xf32> to vector<1x8x128xf32>
    tpu.vector_store %arg6[%189, %c0_53, %c0_54], %192 {strides = array<i32>} : memref<8x8x128xf32, #tpu.memory_space<vmem>>, vector<1x8x128xf32>,
    %c5_i32 = arith.constant 5 : i32
    %193 = arith.index_cast %c5_i32 : i32 to index
    %c0_55 = arith.constant 0 : index
    %c0_56 = arith.constant 0 : index
    %194 = vector.load %arg2[%193, %c0_55, %c0_56] : memref<8x8x128xf32, #tpu.memory_space<vmem>>, vector<1x8x128xf32>
    %195 = vector.shape_cast %194 : vector<1x8x128xf32> to vector<8x128xf32>
    %cst_57 = arith.constant dense<0.000000e+00> : vector<8x512xf32>
    %196 = tpu.matmul %195, %3, %cst_57 {dimension_numbers = #tpu.dot_dimension_numbers<[1], [0], [0], [1], [0, 0, 1, 1], [], []>} : vector<8x128xf32>, vector<128x512xf32>, vector<8x512xf32> -> vector<8x512xf32>
    %cst_58 = arith.constant dense<0.000000e+00> : vector<8x512xf32>
    %197 = tpu.matmul %188, %4, %cst_58 {dimension_numbers = #tpu.dot_dimension_numbers<[1], [0], [0], [1], [0, 0, 1, 1], [], []>} : vector<8x128xf32>, vector<128x512xf32>, vector<8x512xf32> -> vector<8x512xf32>
    %198 = arith.addf %196, %197 : vector<8x512xf32>
    %199 = vector.broadcast %5 : vector<1x512xf32> to vector<8x512xf32>
    %200 = arith.addf %198, %199 : vector<8x512xf32>
    %201 = vector.extract_strided_slice %200 {offsets = [0, 0], sizes = [8, 128], strides = [1, 1]} : vector<8x512xf32> to vector<8x128xf32>
    %202 = arith.negf %201 : vector<8x128xf32>
    %203 = math.exp %202 : vector<8x128xf32>
    %cst_59 = arith.constant 1.000000e+00 : f32
    %204 = vector.broadcast %cst_59 : f32 to vector<8x128xf32>
    %205 = arith.addf %204, %203 : vector<8x128xf32>
    %206 = arith.divf %204, %205 : vector<8x128xf32>
    %207 = vector.extract_strided_slice %200 {offsets = [0, 128], sizes = [8, 128], strides = [1, 1]} : vector<8x512xf32> to vector<8x128xf32>
    %208 = arith.negf %207 : vector<8x128xf32>
    %209 = math.exp %208 : vector<8x128xf32>
    %cst_60 = arith.constant 1.000000e+00 : f32
    %210 = vector.broadcast %cst_60 : f32 to vector<8x128xf32>
    %211 = arith.addf %210, %209 : vector<8x128xf32>
    %212 = arith.divf %210, %211 : vector<8x128xf32>
    %213 = vector.extract_strided_slice %200 {offsets = [0, 256], sizes = [8, 128], strides = [1, 1]} : vector<8x512xf32> to vector<8x128xf32>
    %214 = math.tanh %213 : vector<8x128xf32>
    %215 = vector.extract_strided_slice %200 {offsets = [0, 384], sizes = [8, 128], strides = [1, 1]} : vector<8x512xf32> to vector<8x128xf32>
    %216 = arith.negf %215 : vector<8x128xf32>
    %217 = math.exp %216 : vector<8x128xf32>
    %cst_61 = arith.constant 1.000000e+00 : f32
    %218 = vector.broadcast %cst_61 : f32 to vector<8x128xf32>
    %219 = arith.addf %218, %217 : vector<8x128xf32>
    %220 = arith.divf %218, %219 : vector<8x128xf32>
    %221 = arith.mulf %212, %186 : vector<8x128xf32>
    %222 = arith.mulf %206, %214 : vector<8x128xf32>
    %223 = arith.addf %221, %222 : vector<8x128xf32>
    %224 = math.tanh %223 : vector<8x128xf32>
    %225 = arith.mulf %220, %224 : vector<8x128xf32>
    %226 = arith.index_cast %c5_i32 : i32 to index
    %c0_62 = arith.constant 0 : index
    %c0_63 = arith.constant 0 : index
    %227 = vector.load %arg6[%226, %c0_62, %c0_63] : memref<8x8x128xf32, #tpu.memory_space<vmem>>, vector<1x8x128xf32>
    %228 = vector.shape_cast %227 : vector<1x8x128xf32> to vector<8x128xf32>
    %229 = vector.shape_cast %225 : vector<8x128xf32> to vector<1x8x128xf32>
    tpu.vector_store %arg6[%226, %c0_62, %c0_63], %229 {strides = array<i32>} : memref<8x8x128xf32, #tpu.memory_space<vmem>>, vector<1x8x128xf32>,
    %c6_i32 = arith.constant 6 : i32
    %230 = arith.index_cast %c6_i32 : i32 to index
    %c0_64 = arith.constant 0 : index
    %c0_65 = arith.constant 0 : index
    %231 = vector.load %arg2[%230, %c0_64, %c0_65] : memref<8x8x128xf32, #tpu.memory_space<vmem>>, vector<1x8x128xf32>
    %232 = vector.shape_cast %231 : vector<1x8x128xf32> to vector<8x128xf32>
    %cst_66 = arith.constant dense<0.000000e+00> : vector<8x512xf32>
    %233 = tpu.matmul %232, %3, %cst_66 {dimension_numbers = #tpu.dot_dimension_numbers<[1], [0], [0], [1], [0, 0, 1, 1], [], []>} : vector<8x128xf32>, vector<128x512xf32>, vector<8x512xf32> -> vector<8x512xf32>
    %cst_67 = arith.constant dense<0.000000e+00> : vector<8x512xf32>
    %234 = tpu.matmul %225, %4, %cst_67 {dimension_numbers = #tpu.dot_dimension_numbers<[1], [0], [0], [1], [0, 0, 1, 1], [], []>} : vector<8x128xf32>, vector<128x512xf32>, vector<8x512xf32> -> vector<8x512xf32>
    %235 = arith.addf %233, %234 : vector<8x512xf32>
    %236 = vector.broadcast %5 : vector<1x512xf32> to vector<8x512xf32>
    %237 = arith.addf %235, %236 : vector<8x512xf32>
    %238 = vector.extract_strided_slice %237 {offsets = [0, 0], sizes = [8, 128], strides = [1, 1]} : vector<8x512xf32> to vector<8x128xf32>
    %239 = arith.negf %238 : vector<8x128xf32>
    %240 = math.exp %239 : vector<8x128xf32>
    %cst_68 = arith.constant 1.000000e+00 : f32
    %241 = vector.broadcast %cst_68 : f32 to vector<8x128xf32>
    %242 = arith.addf %241, %240 : vector<8x128xf32>
    %243 = arith.divf %241, %242 : vector<8x128xf32>
    %244 = vector.extract_strided_slice %237 {offsets = [0, 128], sizes = [8, 128], strides = [1, 1]} : vector<8x512xf32> to vector<8x128xf32>
    %245 = arith.negf %244 : vector<8x128xf32>
    %246 = math.exp %245 : vector<8x128xf32>
    %cst_69 = arith.constant 1.000000e+00 : f32
    %247 = vector.broadcast %cst_69 : f32 to vector<8x128xf32>
    %248 = arith.addf %247, %246 : vector<8x128xf32>
    %249 = arith.divf %247, %248 : vector<8x128xf32>
    %250 = vector.extract_strided_slice %237 {offsets = [0, 256], sizes = [8, 128], strides = [1, 1]} : vector<8x512xf32> to vector<8x128xf32>
    %251 = math.tanh %250 : vector<8x128xf32>
    %252 = vector.extract_strided_slice %237 {offsets = [0, 384], sizes = [8, 128], strides = [1, 1]} : vector<8x512xf32> to vector<8x128xf32>
    %253 = arith.negf %252 : vector<8x128xf32>
    %254 = math.exp %253 : vector<8x128xf32>
    %cst_70 = arith.constant 1.000000e+00 : f32
    %255 = vector.broadcast %cst_70 : f32 to vector<8x128xf32>
    %256 = arith.addf %255, %254 : vector<8x128xf32>
    %257 = arith.divf %255, %256 : vector<8x128xf32>
    %258 = arith.mulf %249, %223 : vector<8x128xf32>
    %259 = arith.mulf %243, %251 : vector<8x128xf32>
    %260 = arith.addf %258, %259 : vector<8x128xf32>
    %261 = math.tanh %260 : vector<8x128xf32>
    %262 = arith.mulf %257, %261 : vector<8x128xf32>
    %263 = arith.index_cast %c6_i32 : i32 to index
    %c0_71 = arith.constant 0 : index
    %c0_72 = arith.constant 0 : index
    %264 = vector.load %arg6[%263, %c0_71, %c0_72] : memref<8x8x128xf32, #tpu.memory_space<vmem>>, vector<1x8x128xf32>
    %265 = vector.shape_cast %264 : vector<1x8x128xf32> to vector<8x128xf32>
    %266 = vector.shape_cast %262 : vector<8x128xf32> to vector<1x8x128xf32>
    tpu.vector_store %arg6[%263, %c0_71, %c0_72], %266 {strides = array<i32>} : memref<8x8x128xf32, #tpu.memory_space<vmem>>, vector<1x8x128xf32>,
    %c7_i32 = arith.constant 7 : i32
    %267 = arith.index_cast %c7_i32 : i32 to index
    %c0_73 = arith.constant 0 : index
    %c0_74 = arith.constant 0 : index
    %268 = vector.load %arg2[%267, %c0_73, %c0_74] : memref<8x8x128xf32, #tpu.memory_space<vmem>>, vector<1x8x128xf32>
    %269 = vector.shape_cast %268 : vector<1x8x128xf32> to vector<8x128xf32>
    %cst_75 = arith.constant dense<0.000000e+00> : vector<8x512xf32>
    %270 = tpu.matmul %269, %3, %cst_75 {dimension_numbers = #tpu.dot_dimension_numbers<[1], [0], [0], [1], [0, 0, 1, 1], [], []>} : vector<8x128xf32>, vector<128x512xf32>, vector<8x512xf32> -> vector<8x512xf32>
    %cst_76 = arith.constant dense<0.000000e+00> : vector<8x512xf32>
    %271 = tpu.matmul %262, %4, %cst_76 {dimension_numbers = #tpu.dot_dimension_numbers<[1], [0], [0], [1], [0, 0, 1, 1], [], []>} : vector<8x128xf32>, vector<128x512xf32>, vector<8x512xf32> -> vector<8x512xf32>
    %272 = arith.addf %270, %271 : vector<8x512xf32>
    %273 = vector.broadcast %5 : vector<1x512xf32> to vector<8x512xf32>
    %274 = arith.addf %272, %273 : vector<8x512xf32>
    %275 = vector.extract_strided_slice %274 {offsets = [0, 0], sizes = [8, 128], strides = [1, 1]} : vector<8x512xf32> to vector<8x128xf32>
    %276 = arith.negf %275 : vector<8x128xf32>
    %277 = math.exp %276 : vector<8x128xf32>
    %cst_77 = arith.constant 1.000000e+00 : f32
    %278 = vector.broadcast %cst_77 : f32 to vector<8x128xf32>
    %279 = arith.addf %278, %277 : vector<8x128xf32>
    %280 = arith.divf %278, %279 : vector<8x128xf32>
    %281 = vector.extract_strided_slice %274 {offsets = [0, 128], sizes = [8, 128], strides = [1, 1]} : vector<8x512xf32> to vector<8x128xf32>
    %282 = arith.negf %281 : vector<8x128xf32>
    %283 = math.exp %282 : vector<8x128xf32>
    %cst_78 = arith.constant 1.000000e+00 : f32
    %284 = vector.broadcast %cst_78 : f32 to vector<8x128xf32>
    %285 = arith.addf %284, %283 : vector<8x128xf32>
    %286 = arith.divf %284, %285 : vector<8x128xf32>
    %287 = vector.extract_strided_slice %274 {offsets = [0, 256], sizes = [8, 128], strides = [1, 1]} : vector<8x512xf32> to vector<8x128xf32>
    %288 = math.tanh %287 : vector<8x128xf32>
    %289 = vector.extract_strided_slice %274 {offsets = [0, 384], sizes = [8, 128], strides = [1, 1]} : vector<8x512xf32> to vector<8x128xf32>
    %290 = arith.negf %289 : vector<8x128xf32>
    %291 = math.exp %290 : vector<8x128xf32>
    %cst_79 = arith.constant 1.000000e+00 : f32
    %292 = vector.broadcast %cst_79 : f32 to vector<8x128xf32>
    %293 = arith.addf %292, %291 : vector<8x128xf32>
    %294 = arith.divf %292, %293 : vector<8x128xf32>
    %295 = arith.mulf %286, %260 : vector<8x128xf32>
    %296 = arith.mulf %280, %288 : vector<8x128xf32>
    %297 = arith.addf %295, %296 : vector<8x128xf32>
    %298 = math.tanh %297 : vector<8x128xf32>
    %299 = arith.mulf %294, %298 : vector<8x128xf32>
    %300 = arith.index_cast %c7_i32 : i32 to index
    %c0_80 = arith.constant 0 : index
    %c0_81 = arith.constant 0 : index
    %301 = vector.load %arg6[%300, %c0_80, %c0_81] : memref<8x8x128xf32, #tpu.memory_space<vmem>>, vector<1x8x128xf32>
    %302 = vector.shape_cast %301 : vector<1x8x128xf32> to vector<8x128xf32>
    %303 = vector.shape_cast %299 : vector<8x128xf32> to vector<1x8x128xf32>
    tpu.vector_store %arg6[%300, %c0_80, %c0_81], %303 {strides = array<i32>} : memref<8x8x128xf32, #tpu.memory_space<vmem>>, vector<1x8x128xf32>,
    %c8_i32 = arith.constant 8 : i32
    %c0_82 = arith.constant 0 : index
    %c0_83 = arith.constant 0 : index
    %304 = vector.load %arg7[%c0_82, %c0_83] : memref<8x128xf32, #tpu.memory_space<vmem>>, vector<8x128xf32>
    tpu.vector_store %arg7[%c0_82, %c0_83], %299 {strides = array<i32>} : memref<8x128xf32, #tpu.memory_space<vmem>>, vector<8x128xf32>,
    %c0_84 = arith.constant 0 : index
    %c0_85 = arith.constant 0 : index
    %305 = vector.load %arg8[%c0_84, %c0_85] : memref<8x128xf32, #tpu.memory_space<vmem>>, vector<8x128xf32>
    tpu.vector_store %arg8[%c0_84, %c0_85], %297 {strides = array<i32>} : memref<8x128xf32, #tpu.memory_space<vmem>>, vector<8x128xf32>,
    return
  }
  func.func @transform_0(%arg0: i32, %arg1: i32) -> (i32, i32, i32) {
    %c0_i32 = arith.constant 0 : i32
    %c0_i32_0 = arith.constant 0 : i32
    return %arg1, %arg0, %c0_i32 : i32, i32, i32
  }
  func.func @transform_1(%arg0: i32, %arg1: i32) -> (i32, i32) {
    %c0_i32 = arith.constant 0 : i32
    %c0_i32_0 = arith.constant 0 : i32
    %c0_i32_1 = arith.constant 0 : i32
    return %c0_i32, %c0_i32_0 : i32, i32
  }
  func.func @transform_2(%arg0: i32, %arg1: i32) -> (i32, i32) {
    %c0_i32 = arith.constant 0 : i32
    %c0_i32_0 = arith.constant 0 : i32
    %c0_i32_1 = arith.constant 0 : i32
    return %c0_i32, %c0_i32_0 : i32, i32
  }
  func.func @transform_3(%arg0: i32, %arg1: i32) -> (i32, i32) {
    %c0_i32 = arith.constant 0 : i32
    %c0_i32_0 = arith.constant 0 : i32
    %c0_i32_1 = arith.constant 0 : i32
    return %c0_i32, %c0_i32_0 : i32, i32
  }
  func.func @transform_4(%arg0: i32, %arg1: i32) -> (i32, i32, i32) {
    %c0_i32 = arith.constant 0 : i32
    %c0_i32_0 = arith.constant 0 : i32
    return %arg1, %arg0, %c0_i32 : i32, i32, i32
  }
}

</mosaic_0001>

<bundles_post_ra>
// kernel: tpu_custom_call.1
= control target key start
LH: loop header
LB: loop body
LE: loop exit
PB: predicated region body
PF: predicated region fallthrough
CT: control target
= control target key end

     0   :  { %9 = vsyncpa [#allocation5], 0  ;;  %s4913_s0 = inlined_call_operand.hbm [shape: f32[8,8,128], index: 0, kind: input, shape index: {}]   ;;  %s4914_s1 = inlined_call_operand.hbm [shape: f32[128,512], index: 1, kind: input, shape index: {}]   ;;  %s4915_s2 = inlined_call_operand.hbm [shape: f32[128,512], index: 2, kind: input, shape index: {}]   ;;  %s4916_s3 = inlined_call_operand.vmem [shape: f32[1,512], index: 3, kind: input, shape index: {}]   ;;  %s4917_s4 = inlined_call_operand.hbm [shape: f32[8,8,128], index: 4, kind: output, shape index: {}]  }
   0x1   :  { %10 = vsyncpa [#allocation8], 0 }
   0x2   :  { %11 = vsyncpa [#allocation6], 0  ;;  %s4074_s15 = smov [#allocation7]   ;;  %s3980_s19 = scalar_lea.hbm %s4914_s1, 8192 }
   0x3   :  { %s29_s16 = sshll.u32 %s4074_s15, 4  ;;  %p3981_p0 = scmp.ne.s32.totalorder %s4914_s1, %s3980_s19  ;;  %s30_s16 = int_to_ptr.vmem [resolvable:$true] %s29_s16 }
   0x4   :  { %p3984_p1 = scmp.lt.u32.totalorder %s3980_s19, %s4914_s1 }
   0x6   :  { %p3986_p2 = pnand %p3984_p1, %p3981_p0 }
   0x8   :  { %3989 = shalt.err (!%p3986_p2)
}
   0x9   :  { %s3990_s24 = scalar_lea.vmem %s30_s16, 8192  ;;  %p3995_p4 = scmp.lt.s32.totalorder %s30_s16, %s30_s16 }
   0xa   :  { %p3991_p3 = scmp.ne.s32.totalorder %s30_s16, %s3990_s24  ;;  %p3996_p5 = scmp.lt.s32.totalorder %s3990_s24, %s3990_s24 }
   0xc   :  { %p3997_p6 = por %p3996_p5, %p3995_p4 }
   0xe   :  { %p3998_p7 = pnand %p3997_p6, %p3991_p3 }
  0x10   :  { %4001 = shalt.err (!%p3998_p7)
}
  0x11   :  { %s4075_s25 = smov 512   ;;  %s4076_s26 = smov 32  }
  0x12   :  { %35 = dma.hbm_to_vmem [thread:$0]  %s4914_s1, 8192, %s30_s16, [#allocation8], %s4075_s25, %s4075_s25, %s4076_s26  }
  0x13   :  { %s4077_s29 = smov [#allocation4]   ;;  %s4002_s7 = scalar_lea.hbm %s4913_s0, 1024 }
  0x14   :  { %s17_s30 = sshll.u32 %s4077_s29, 4  ;;  %p4003_p8 = scmp.ne.s32.totalorder %s4913_s0, %s4002_s7  ;;  %s18_s30 = int_to_ptr.vmem [resolvable:$true] %s17_s30 }
  0x15   :  { %p4006_p9 = scmp.lt.u32.totalorder %s4002_s7, %s4913_s0 }
  0x17   :  { %p4008_p10 = pnand %p4006_p9, %p4003_p8 }
  0x19   :  { %4011 = shalt.err (!%p4008_p10)
}
  0x1a   :  { %s4012_s12 = scalar_lea.vmem %s18_s30, 1024  ;;  %p4017_p12 = scmp.lt.s32.totalorder %s18_s30, %s18_s30 }
  0x1b   :  { %p4013_p11 = scmp.ne.s32.totalorder %s18_s30, %s4012_s12  ;;  %p4018_p13 = scmp.lt.s32.totalorder %s4012_s12, %s4012_s12 }
  0x1d   :  { %p4019_p0 = por %p4018_p13, %p4017_p12 }
  0x1f   :  { %p4020_p1 = pnand %p4019_p0, %p4013_p11 }
  0x21   :  { %4023 = shalt.err (!%p4020_p1)
}
  0x22   :  { %s4078_s1 = smov 128   ;;  %s4079_s13 = smov 8  }
  0x23   :  { %23 = dma.hbm_to_vmem [thread:$0]  %s4913_s0, 1024, %s18_s30, [#allocation5], %s4078_s1, %s4078_s1, %s4079_s13  }
  0x24   :  { %s4080_s16 = smov [#allocation9]   ;;  %s4024_s20 = scalar_lea.hbm %s4915_s2, 8192 }
  0x25   :  { %s41_s17 = sshll.u32 %s4080_s16, 4  ;;  %p4025_p2 = scmp.ne.s32.totalorder %s4915_s2, %s4024_s20  ;;  %s42_s17 = int_to_ptr.vmem [resolvable:$true] %s41_s17 }
  0x26   :  { %p4028_p3 = scmp.lt.u32.totalorder %s4024_s20, %s4915_s2 }
  0x28   :  { %p4030_p4 = pnand %p4028_p3, %p4025_p2 }
  0x2a   :  { %4033 = shalt.err (!%p4030_p4)
}
  0x2b   :  { %s4034_s27 = scalar_lea.vmem %s42_s17, 8192  ;;  %p4039_p6 = scmp.lt.s32.totalorder %s42_s17, %s42_s17 }
  0x2c   :  { %p4035_p5 = scmp.ne.s32.totalorder %s42_s17, %s4034_s27  ;;  %p4040_p7 = scmp.lt.s32.totalorder %s4034_s27, %s4034_s27 }
  0x2e   :  { %p4041_p8 = por %p4040_p7, %p4039_p6 }
  0x30   :  { %p4042_p9 = pnand %p4041_p8, %p4035_p5 }
  0x32   :  { %4045 = shalt.err (!%p4042_p9)
}
  0x33   :  { %47 = dma.hbm_to_vmem [thread:$0]  %s4915_s2, 8192, %s42_s17, [#allocation8], %s4075_s25, %s4075_s25, %s4076_s26  }
  0x34   :  { %4068 = dma.done.wait [#allocation5], 1024  }
  0x35   :  { %4069 = vsyncadd [#allocation5], 4294966272 }
  0x36   :  { %4070 = dma.done.wait [#allocation8], 16384  }
  0x37   :  { %4071 = vsyncadd [#allocation8], 4294950912  ;;  %v4918_v0 = vmov 0.0   ;;  %v130_v1 = vld [vmem:[#allocation9 + $0x8] sm:$0xff]  ;;  %v132_v3 = vld [vmem:[#allocation9 + $0x18] sm:$0xff] }
  0x38   :  { %261 = vmatprep.mubr.f32.mxu0 %v4918_v0  ;;  %332 = vmatprep.mubr.f32.mxu1 %v4918_v0  ;;  %v134_v2 = vld [vmem:[#allocation9 + $0x28] sm:$0xff]  ;;  %v136_v5 = vld [vmem:[#allocation9 + $0x38] sm:$0xff]  ;;  %v129_v6 = vld [vmem:[#allocation9] sm:$0xff] }
  0x39   :  { %v4155_v4 = vpack.c.bf16 %v134_v2, %v130_v1  ;;  %v133_v7 = vld [vmem:[#allocation9 + $0x20] sm:$0xff]  ;;  %v4157_v8 = vpack.c.bf16 %v136_v5, %v132_v3  ;;  %v131_v10 = vld [vmem:[#allocation9 + $0x10] sm:$0xff]  ;;  %v138_v12 = vld [vmem:[#allocation9 + $0x48] sm:$0xff] }
  0x3a   :  { %v4159_v9 = vpack.c.bf16 %v133_v7, %v129_v6  ;;  %v135_v11 = vld [vmem:[#allocation9 + $0x30] sm:$0xff]  ;;  %v142_v14 = vld [vmem:[#allocation9 + $0x68] sm:$0xff]  ;;  %v140_v15 = vld [vmem:[#allocation9 + $0x58] sm:$0xff] }
  0x3b   :  { %2788 = vmatprep.subr.bf16.mxu0 %v4155_v4  ;;  %v4162_v13 = vpack.c.bf16 %v135_v11, %v131_v10  ;;  %v144_v16 = vld [vmem:[#allocation9 + $0x78] sm:$0xff]  ;;  %2820 = vmatprep.subr.bf16.mxu1 %v4157_v8  ;;  %v4166_v17 = vpack.c.bf16 %v142_v14, %v138_v12  ;;  %v137_v19 = vld [vmem:[#allocation9 + $0x40] sm:$0xff]  ;;  %v139_v21 = vld [vmem:[#allocation9 + $0x50] sm:$0xff] }
  0x3c   :  { %2790 = vmatpush1.bf16.msra.mxu0 %v4159_v9  ;;  %v4168_v18 = vpack.c.bf16 %v144_v16, %v140_v15  ;;  %v141_v20 = vld [vmem:[#allocation9 + $0x60] sm:$0xff]  ;;  %v143_v23 = vld [vmem:[#allocation9 + $0x70] sm:$0xff]  ;;  %v146_v24 = vld [vmem:[#allocation9 + $0x88] sm:$0xff] }
  0x3d   :  { %2822 = vmatpush1.bf16.msra.mxu1 %v4162_v13  ;;  %v4171_v22 = vpack.c.bf16 %v141_v20, %v137_v19  ;;  %v150_v25 = vld [vmem:[#allocation9 + $0xa8] sm:$0xff]  ;;  %2792 = vmatprep.subr.bf16.mxu0 %v4166_v17  ;;  %v4175_v26 = vpack.c.bf16 %v143_v23, %v139_v21  ;;  %v148_v28 = vld [vmem:[#allocation9 + $0x98] sm:$0xff]  ;;  %v145_v30 = vld [vmem:[#allocation9 + $0x80] sm:$0xff] }
  0x3e   :  { %2824 = vmatprep.subr.bf16.mxu1 %v4168_v18  ;;  %v4177_v27 = vpack.c.bf16 %v150_v25, %v146_v24  ;;  %v152_v29 = vld [vmem:[#allocation9 + $0xb8] sm:$0xff]  ;;  %v149_v32 = vld [vmem:[#allocation9 + $0xa0] sm:$0xff]  ;;  %v147_v33 = vld [vmem:[#allocation9 + $0x90] sm:$0xff] }
  0x3f   :  { %v4179_v31 = vpack.c.bf16 %v152_v29, %v148_v28  ;;  %v151_v34 = vld [vmem:[#allocation9 + $0xb0] sm:$0xff]  ;;  %v4182_v35 = vpack.c.bf16 %v149_v32, %v145_v30  ;;  %v154_v36 = vld [vmem:[#allocation9 + $0xc8] sm:$0xff]  ;;  %v156_v38 = vld [vmem:[#allocation9 + $0xd8] sm:$0xff] }
  0x40   :  { %2794 = vmatpush1.bf16.msra.mxu0 %v4171_v22  ;;  %v158_v37 = vld [vmem:[#allocation9 + $0xe8] sm:$0xff]  ;;  %v4186_v39 = vpack.c.bf16 %v151_v34, %v147_v33  ;;  %v160_v41 = vld [vmem:[#allocation9 + $0xf8] sm:$0xff]  ;;  %v153_v42 = vld [vmem:[#allocation9 + $0xc0] sm:$0xff] }
  0x41   :  { %2826 = vmatpush1.bf16.msra.mxu1 %v4175_v26  ;;  %2796 = vmatprep.subr.bf16.mxu0 %v4177_v27  ;;  %v4188_v40 = vpack.c.bf16 %v158_v37, %v154_v36  ;;  %v157_v43 = vld [vmem:[#allocation9 + $0xe0] sm:$0xff]  ;;  %v4191_v44 = vpack.c.bf16 %v160_v41, %v156_v38  ;;  %v155_v45 = vld [vmem:[#allocation9 + $0xd0] sm:$0xff]  ;;  %v162_v47 = vld [vmem:[#allocation9 + $0x108] sm:$0xff] }
  0x42   :  { %2828 = vmatprep.subr.bf16.mxu1 %v4179_v31  ;;  %v159_v46 = vld [vmem:[#allocation9 + $0xf0] sm:$0xff]  ;;  %v166_v48 = vld [vmem:[#allocation9 + $0x128] sm:$0xff]  ;;  %v164_v49 = vld [vmem:[#allocation9 + $0x118] sm:$0xff]  ;;  %v4194_v51 = vpack.c.bf16 %v157_v43, %v153_v42 }
  0x43   :  { %4984 = vst [vmem:[#allocation14_spill] sm:$0xff] %v4191_v44  ;;  %v168_v50 = vld [vmem:[#allocation9 + $0x138] sm:$0xff]  ;;  %v4198_v52 = vpack.c.bf16 %v159_v46, %v155_v45  ;;  %v4200_v53 = vpack.c.bf16 %v166_v48, %v162_v47  ;;  %v161_v54 = vld [vmem:[#allocation9 + $0x100] sm:$0xff]  ;;  %v163_v56 = vld [vmem:[#allocation9 + $0x110] sm:$0xff] }
  0x44   :  { %2798 = vmatpush1.bf16.msra.mxu0 %v4182_v35  ;;  %4985 = vst [vmem:[#allocation15_spill] sm:$0xff] %v4194_v51  ;;  %v165_v55 = vld [vmem:[#allocation9 + $0x120] sm:$0xff]  ;;  %v4203_v57 = vpack.c.bf16 %v168_v50, %v164_v49  ;;  %v167_v58 = vld [vmem:[#allocation9 + $0x130] sm:$0xff]  ;;  %v170_v59 = vld [vmem:[#allocation9 + $0x148] sm:$0xff] }
  0x45   :  { %2830 = vmatpush1.bf16.msra.mxu1 %v4186_v39  ;;  %2800 = vmatprep.subr.bf16.mxu0 %v4188_v40  ;;  %4986 = vst [vmem:[#allocation16_spill] sm:$0xff] %v4198_v52  ;;  %4987 = vst [vmem:[#allocation17_spill] sm:$0xff] %v4200_v53  ;;  %v174_v60 = vld [vmem:[#allocation9 + $0x168] sm:$0xff]  ;;  %v172_v61 = vld [vmem:[#allocation9 + $0x158] sm:$0xff]  ;;  %v4206_v63 = vpack.c.bf16 %v165_v55, %v161_v54  ;;  %v4210_v1 = vpack.c.bf16 %v167_v58, %v163_v56 }
  0x46   :  { %2832 = vmatprep.subr.bf16.mxu1 %v4191_v44  ;;  %4988 = vst [vmem:[#allocation18_spill] sm:$0xff] %v4203_v57  ;;  %v176_v62 = vld [vmem:[#allocation9 + $0x178] sm:$0xff]  ;;  %v4212_v2 = vpack.c.bf16 %v174_v60, %v170_v59  ;;  %v169_v3 = vld [vmem:[#allocation9 + $0x140] sm:$0xff]  ;;  %v171_v6 = vld [vmem:[#allocation9 + $0x150] sm:$0xff] }
  0x47   :  { %4989 = vst [vmem:[#allocation19_spill] sm:$0xff] %v4206_v63  ;;  %4990 = vst [vmem:[#allocation20_spill] sm:$0xff] %v4210_v1  ;;  %v173_v5 = vld [vmem:[#allocation9 + $0x160] sm:$0xff]  ;;  %v4215_v7 = vpack.c.bf16 %v176_v62, %v172_v61  ;;  %v175_v10 = vld [vmem:[#allocation9 + $0x170] sm:$0xff] }
  0x48   :  { %2802 = vmatpush1.bf16.msra.mxu0 %v4194_v51  ;;  %4991 = vst [vmem:[#allocation21_spill] sm:$0xff] %v4212_v2  ;;  %v178_v11 = vld [vmem:[#allocation9 + $0x188] sm:$0xff]  ;;  %v180_v14 = vld [vmem:[#allocation9 + $0x198] sm:$0xff]  ;;  %v4218_v16 = vpack.c.bf16 %v173_v5, %v169_v3  ;;  %v4222_v19 = vpack.c.bf16 %v175_v10, %v171_v6  ;;  %v177_v21 = vld [vmem:[#allocation9 + $0x180] sm:$0xff] }
  0x49   :  { %2834 = vmatpush1.bf16.msra.mxu1 %v4198_v52  ;;  %2804 = vmatprep.subr.bf16.mxu0 %v4200_v53  ;;  %4992 = vst [vmem:[#allocation22_spill] sm:$0xff] %v4215_v7  ;;  %v182_v12 = vld [vmem:[#allocation9 + $0x1a8] sm:$0xff]  ;;  %v184_v15 = vld [vmem:[#allocation9 + $0x1b8] sm:$0xff]  ;;  %v181_v23 = vld [vmem:[#allocation9 + $0x1a0] sm:$0xff] }
  0x4a   :  { %2836 = vmatprep.subr.bf16.mxu1 %v4203_v57  ;;  %4993 = vst [vmem:[#allocation23_spill] sm:$0xff] %v4218_v16  ;;  %4994 = vst [vmem:[#allocation24_spill] sm:$0xff] %v4222_v19  ;;  %v4224_v20 = vpack.c.bf16 %v182_v12, %v178_v11  ;;  %v179_v24 = vld [vmem:[#allocation9 + $0x190] sm:$0xff]  ;;  %v4227_v25 = vpack.c.bf16 %v184_v15, %v180_v14  ;;  %v186_v29 = vld [vmem:[#allocation9 + $0x1c8] sm:$0xff]  ;;  %v4230_v34 = vpack.c.bf16 %v181_v23, %v177_v21 }
  0x4b   :  { %v183_v28 = vld [vmem:[#allocation9 + $0x1b0] sm:$0xff]  ;;  %v190_v30 = vld [vmem:[#allocation9 + $0x1e8] sm:$0xff]  ;;  %v188_v32 = vld [vmem:[#allocation9 + $0x1d8] sm:$0xff] }
  0x4c   :  { %2806 = vmatpush1.bf16.msra.mxu0 %v4206_v63  ;;  %4995 = vst [vmem:[#allocation25_spill] sm:$0xff] %v4224_v20  ;;  %4996 = vst [vmem:[#allocation26_spill] sm:$0xff] %v4227_v25  ;;  %v192_v33 = vld [vmem:[#allocation9 + $0x1f8] sm:$0xff]  ;;  %v4234_v36 = vpack.c.bf16 %v183_v28, %v179_v24  ;;  %v4236_v37 = vpack.c.bf16 %v190_v30, %v186_v29  ;;  %v185_v38 = vld [vmem:[#allocation9 + $0x1c0] sm:$0xff] }
  0x4d   :  { %2838 = vmatpush1.bf16.msra.mxu1 %v4210_v1  ;;  %2808 = vmatprep.subr.bf16.mxu0 %v4212_v2  ;;  %4997 = vst [vmem:[#allocation27_spill] sm:$0xff] %v4230_v34  ;;  %v189_v41 = vld [vmem:[#allocation9 + $0x1e0] sm:$0xff]  ;;  %v187_v42 = vld [vmem:[#allocation9 + $0x1d0] sm:$0xff]  ;;  %v4239_v43 = vpack.c.bf16 %v192_v33, %v188_v32  ;;  %v66_v46 = vld [vmem:[#allocation7 + $0x8] sm:$0xff] }
  0x4e   :  { %2840 = vmatprep.subr.bf16.mxu1 %v4215_v7  ;;  %4998 = vst [vmem:[#allocation28_spill] sm:$0xff] %v4234_v36  ;;  %4999 = vst [vmem:[#allocation29_spill] sm:$0xff] %v4236_v37  ;;  %v191_v45 = vld [vmem:[#allocation9 + $0x1f0] sm:$0xff]  ;;  %v70_v47 = vld [vmem:[#allocation7 + $0x28] sm:$0xff]  ;;  %v4242_v50 = vpack.c.bf16 %v189_v41, %v185_v38 }
  0x4f   :  { %5000 = vst [vmem:[#allocation30_spill] sm:$0xff] %v4239_v43  ;;  %v68_v48 = vld [vmem:[#allocation7 + $0x18] sm:$0xff]  ;;  %v4246_v54 = vpack.c.bf16 %v191_v45, %v187_v42  ;;  %v4248_v55 = vpack.c.bf16 %v70_v47, %v66_v46  ;;  %v65_v56 = vld [vmem:[#allocation7] sm:$0xff]  ;;  %v67_v59 = vld [vmem:[#allocation7 + $0x10] sm:$0xff] }
  0x50   :  { %2810 = vmatpush1.bf16.msra.mxu0 %v4218_v16  ;;  %v72_v49 = vld [vmem:[#allocation7 + $0x38] sm:$0xff]  ;;  %5001 = vst [vmem:[#allocation31_spill] sm:$0xff] %v4242_v50  ;;  %v69_v58 = vld [vmem:[#allocation7 + $0x20] sm:$0xff]  ;;  %v71_v61 = vld [vmem:[#allocation7 + $0x30] sm:$0xff] }
  0x51   :  { %2842 = vmatpush1.bf16.msra.mxu1 %v4222_v19  ;;  %2812 = vmatprep.subr.bf16.mxu0 %v4224_v20  ;;  %5002 = vst [vmem:[#allocation32_spill] sm:$0xff] %v4246_v54  ;;  %5003 = vst [vmem:[#allocation33_spill] sm:$0xff] %v4248_v55  ;;  %v4251_v60 = vpack.c.bf16 %v72_v49, %v68_v48  ;;  %v74_v62 = vld [vmem:[#allocation7 + $0x48] sm:$0xff]  ;;  %v76_v5 = vld [vmem:[#allocation7 + $0x58] sm:$0xff]  ;;  %v4254_v10 = vpack.c.bf16 %v69_v58, %v65_v56 }
  0x52   :  { %2844 = vmatprep.subr.bf16.mxu1 %v4227_v25  ;;  %v78_v3 = vld [vmem:[#allocation7 + $0x68] sm:$0xff]  ;;  %v80_v6 = vld [vmem:[#allocation7 + $0x78] sm:$0xff]  ;;  %v4258_v11 = vpack.c.bf16 %v71_v61, %v67_v59  ;;  %v73_v14 = vld [vmem:[#allocation7 + $0x40] sm:$0xff] }
  0x53   :  { %5004 = vst [vmem:[#allocation34_spill] sm:$0xff] %v4251_v60  ;;  %v4260_v12 = vpack.c.bf16 %v78_v3, %v74_v62  ;;  %v77_v15 = vld [vmem:[#allocation7 + $0x60] sm:$0xff]  ;;  %v75_v21 = vld [vmem:[#allocation7 + $0x50] sm:$0xff]  ;;  %v4263_v23 = vpack.c.bf16 %v80_v6, %v76_v5  ;;  %v82_v28 = vld [vmem:[#allocation7 + $0x88] sm:$0xff] }
  0x54   :  { %2814 = vmatpush1.bf16.msra.mxu0 %v4230_v34  ;;  %v79_v24 = vld [vmem:[#allocation7 + $0x70] sm:$0xff]  ;;  %v86_v29 = vld [vmem:[#allocation7 + $0xa8] sm:$0xff]  ;;  %v84_v30 = vld [vmem:[#allocation7 + $0x98] sm:$0xff]  ;;  %v4268_v33 = vpack.c.bf16 %v77_v15, %v73_v14 }
  0x55   :  { %2846 = vmatpush1.bf16.msra.mxu1 %v4234_v36  ;;  %2816 = vmatprep.subr.bf16.mxu0 %v4236_v37  ;;  %v88_v32 = vld [vmem:[#allocation7 + $0xb8] sm:$0xff]  ;;  %v4272_v38 = vpack.c.bf16 %v79_v24, %v75_v21  ;;  %v4274_v41 = vpack.c.bf16 %v86_v29, %v82_v28  ;;  %v81_v42 = vld [vmem:[#allocation7 + $0x80] sm:$0xff]  ;;  %v83_v46 = vld [vmem:[#allocation7 + $0x90] sm:$0xff] }
  0x56   :  { %2848 = vmatprep.subr.bf16.mxu1 %v4239_v43  ;;  %v85_v45 = vld [vmem:[#allocation7 + $0xa0] sm:$0xff]  ;;  %v4277_v47 = vpack.c.bf16 %v88_v32, %v84_v30  ;;  %v87_v48 = vld [vmem:[#allocation7 + $0xb0] sm:$0xff]  ;;  %v90_v49 = vld [vmem:[#allocation7 + $0xc8] sm:$0xff] }
  0x57   :  { %v94_v56 = vld [vmem:[#allocation7 + $0xe8] sm:$0xff]  ;;  %v92_v58 = vld [vmem:[#allocation7 + $0xd8] sm:$0xff]  ;;  %v4282_v61 = vpack.c.bf16 %v85_v45, %v81_v42  ;;  %v4286_v62 = vpack.c.bf16 %v87_v48, %v83_v46  ;;  %v89_v5 = vld [vmem:[#allocation7 + $0xc0] sm:$0xff] }
  0x58   :  { %2818 = vmatpush1.bf16.msra.mxu0 %v4242_v50  ;;  %v96_v59 = vld [vmem:[#allocation7 + $0xf8] sm:$0xff]  ;;  %v4288_v3 = vpack.c.bf16 %v94_v56, %v90_v49  ;;  %v93_v6 = vld [vmem:[#allocation7 + $0xe0] sm:$0xff]  ;;  %v91_v14 = vld [vmem:[#allocation7 + $0xd0] sm:$0xff] }
  0x59   :  { %2850 = vmatpush1.bf16.msra.mxu1 %v4246_v54  ;;  %2852 = vmatprep.subr.bf16.mxu0 %v4248_v55  ;;  %5005 = vst [vmem:[#allocation35_spill] sm:$0xff] %v4286_v62  ;;  %v4291_v15 = vpack.c.bf16 %v96_v59, %v92_v58  ;;  %v95_v21 = vld [vmem:[#allocation7 + $0xf0] sm:$0xff]  ;;  %v98_v24 = vld [vmem:[#allocation7 + $0x108] sm:$0xff]  ;;  %v100_v29 = vld [vmem:[#allocation7 + $0x118] sm:$0xff]  ;;  %v4294_v32 = vpack.c.bf16 %v93_v6, %v89_v5 }
  0x5a   :  { %2884 = vmatprep.subr.bf16.mxu1 %v4251_v60  ;;  %5006 = vst [vmem:[#allocation36_spill] sm:$0xff] %v4288_v3  ;;  %v102_v28 = vld [vmem:[#allocation7 + $0x128] sm:$0xff]  ;;  %v104_v30 = vld [vmem:[#allocation7 + $0x138] sm:$0xff]  ;;  %v4298_v42 = vpack.c.bf16 %v95_v21, %v91_v14  ;;  %v97_v46 = vld [vmem:[#allocation7 + $0x100] sm:$0xff] }
  0x5b   :  { %262 = vmatmul.mubr.f32.vlgmr.msra.gmra.mrb[0].mxu0 %v4918_v0  ;;  %5007 = vst [vmem:[#allocation37_spill] sm:$0xff] %v4291_v15  ;;  %5008 = vst [vmem:[#allocation38_spill] sm:$0xff] %v4294_v32  ;;  %v4300_v45 = vpack.c.bf16 %v102_v28, %v98_v24  ;;  %v101_v48 = vld [vmem:[#allocation7 + $0x120] sm:$0xff]  ;;  %v99_v49 = vld [vmem:[#allocation7 + $0x110] sm:$0xff]  ;;  %v4303_v56 = vpack.c.bf16 %v104_v30, %v100_v29 }
  0x5c   :  { %333 = vmatmul.mubr.f32.vlgmr.msra.gmra.mrb[0].mxu1 %v4918_v0  ;;  %2854 = vmatpush1.bf16.msra.mxu0 %v4254_v10  ;;  %5009 = vst [vmem:[#allocation39_spill] sm:$0xff] %v4298_v42  ;;  %v103_v58 = vld [vmem:[#allocation7 + $0x130] sm:$0xff]  ;;  %v106_v59 = vld [vmem:[#allocation7 + $0x148] sm:$0xff]  ;;  %v108_v5 = vld [vmem:[#allocation7 + $0x158] sm:$0xff] }
  0x5d   :  { %2886 = vmatpush1.bf16.msra.mxu1 %v4258_v11  ;;  %2856 = vmatprep.subr.bf16.mxu0 %v4260_v12  ;;  %5010 = vst [vmem:[#allocation40_spill] sm:$0xff] %v4300_v45  ;;  %5011 = vst [vmem:[#allocation41_spill] sm:$0xff] %v4303_v56  ;;  %v112_v6 = vld [vmem:[#allocation7 + $0x178] sm:$0xff]  ;;  %v4310_v14 = vpack.c.bf16 %v103_v58, %v99_v49  ;;  %v105_v24 = vld [vmem:[#allocation7 + $0x140] sm:$0xff] }
  0x5e   :  { %2888 = vmatprep.subr.bf16.mxu1 %v4263_v23  ;;  %403 = vmatprep.mubr.f32.mxu0 %v4918_v0  ;;  %v109_v28 = vld [vmem:[#allocation7 + $0x160] sm:$0xff]  ;;  %v107_v29 = vld [vmem:[#allocation7 + $0x150] sm:$0xff]  ;;  %v4315_v30 = vpack.c.bf16 %v112_v6, %v108_v5 }
  0x5f   :  { %474 = vmatprep.mubr.f32.mxu1 %v4918_v0  ;;  %v110_v0 = vld [vmem:[#allocation7 + $0x168] sm:$0xff]  ;;  %5013 = vst [vmem:[#allocation43_spill] sm:$0xff] %v4310_v14  ;;  %v113_v58 = vld [vmem:[#allocation7 + $0x180] sm:$0xff]  ;;  %v115_v5 = vld [vmem:[#allocation7 + $0x190] sm:$0xff] }
  0x60   :  { %2858 = vmatpush1.bf16.msra.mxu0 %v4268_v33  ;;  %v4312_v21 = vpack.c.bf16 %v110_v0, %v106_v59  ;;  %5014 = vst [vmem:[#allocation44_spill] sm:$0xff] %v4315_v30  ;;  %v117_v59 = vld [vmem:[#allocation7 + $0x1a0] sm:$0xff] }
  0x61   :  { %2890 = vmatpush1.bf16.msra.mxu1 %v4272_v38  ;;  %2860 = vmatprep.subr.bf16.mxu0 %v4274_v41 }
  0x62   :  { %2892 = vmatprep.subr.bf16.mxu1 %v4277_v47 }
  0x64   :  { %2862 = vmatpush1.bf16.msra.mxu0 %v4282_v61 }
  0x65   :  { %2894 = vmatpush1.bf16.msra.mxu1 %v4286_v62  ;;  %2864 = vmatprep.subr.bf16.mxu0 %v4288_v3  ;;  %v4306_v62 = vpack.c.bf16 %v101_v48, %v97_v46  ;;  %v114_v3 = vld [vmem:[#allocation7 + $0x188] sm:$0xff]  ;;  %v116_v46 = vld [vmem:[#allocation7 + $0x198] sm:$0xff] }
  0x66   :  { %2896 = vmatprep.subr.bf16.mxu1 %v4291_v15  ;;  %v111_v15 = vld [vmem:[#allocation7 + $0x170] sm:$0xff]  ;;  %v120_v48 = vld [vmem:[#allocation7 + $0x1b8] sm:$0xff] }
  0x67   :  { %5012 = vst [vmem:[#allocation42_spill] sm:$0xff] %v4306_v62  ;;  %v4322_v0 = vpack.c.bf16 %v111_v15, %v107_v29  ;;  %v4327_v6 = vpack.c.bf16 %v120_v48, %v116_v46  ;;  %v125_v29 = vld [vmem:[#allocation7 + $0x1e0] sm:$0xff]  ;;  %v123_v48 = vld [vmem:[#allocation7 + $0x1d0] sm:$0xff] }
  0x68   :  { %2866 = vmatpush1.bf16.msra.mxu0 %v4294_v32  ;;  %v118_v32 = vld [vmem:[#allocation7 + $0x1a8] sm:$0xff] }
  0x69   :  { %2898 = vmatpush1.bf16.msra.mxu1 %v4298_v42  ;;  %2868 = vmatprep.subr.bf16.mxu0 %v4300_v45  ;;  %v4318_v42 = vpack.c.bf16 %v109_v28, %v105_v24  ;;  %v4324_v49 = vpack.c.bf16 %v118_v32, %v114_v3  ;;  %v122_v45 = vld [vmem:[#allocation7 + $0x1c8] sm:$0xff]  ;;  %v124_v24 = vld [vmem:[#allocation7 + $0x1d8] sm:$0xff]  ;;  %v121_v32 = vld [vmem:[#allocation7 + $0x1c0] sm:$0xff] }
  0x6a   :  { %2900 = vmatprep.subr.bf16.mxu1 %v4303_v56  ;;  %v119_v56 = vld [vmem:[#allocation7 + $0x1b0] sm:$0xff]  ;;  %v128_v28 = vld [vmem:[#allocation7 + $0x1f8] sm:$0xff] }
  0x6b   :  { %v4334_v3 = vpack.c.bf16 %v119_v56, %v115_v5  ;;  %v4339_v46 = vpack.c.bf16 %v128_v28, %v124_v24  ;;  %v193_v24 = vld [vmem:[%s4916_s3] sm:$0xf]  ;;  %s4082_s3 = smov [#allocation10]  }
  0x6c   :  { %2870 = vmatpush1.bf16.msra.mxu0 %v4306_v62  ;;  %v126_v62 = vld [vmem:[#allocation7 + $0x1e8] sm:$0xff]  ;;  %s2750_s26 = sshll.u32 %s4082_s3, 4  ;;  %s2751_s26 = int_to_ptr.vmem [resolvable:$true] %s2750_s26 }
  0x6d   :  { %2902 = vmatpush1.bf16.msra.mxu1 %v4310_v14  ;;  %2872 = vmatprep.subr.bf16.mxu0 %v4312_v21  ;;  %v4330_v14 = vpack.c.bf16 %v117_v59, %v113_v58  ;;  %v4336_v15 = vpack.c.bf16 %v126_v62, %v122_v45  ;;  %v4342_v58 = vpack.c.bf16 %v125_v29, %v121_v32  ;;  %v196_v62 = vld [vmem:[#allocation4] sm:$0xff]  ;;  %v5015_v45 = vmov 0.0   ;;  %s4046_s29 = scalar_lea.vmem %s2751_s26, 1024  ;;  %p4051_p11 = scmp.lt.s32.totalorder %s2751_s26, %s2751_s26 }
  0x6e   :  { %2904 = vmatprep.subr.bf16.mxu1 %v4315_v30  ;;  %v127_v30 = vld [vmem:[#allocation7 + $0x1f0] sm:$0xff]  ;;  %p4047_p10 = scmp.ne.s32.totalorder %s2751_s26, %s4046_s29  ;;  %p4052_p12 = scmp.lt.s32.totalorder %s4046_s29, %s4046_s29 }
  0x6f   :  { %v4346_v56 = vpack.c.bf16 %v127_v30, %v123_v48  ;;  %v482_v30 = vlaneseq }
  0x70   :  { %2874 = vmatpush1.bf16.msra.mxu0 %v4318_v42  ;;  %p4053_p13 = por %p4052_p12, %p4051_p11 }
  0x71   :  { %2906 = vmatpush1.bf16.msra.mxu1 %v4322_v0  ;;  %2876 = vmatprep.subr.bf16.mxu0 %v4324_v49  ;;  %v483_v59 = vshrl.u32 %v482_v30, 7 }
  0x72   :  { %2908 = vmatprep.subr.bf16.mxu1 %v4327_v6  ;;  %p4054_p0 = pnand %p4053_p13, %p4047_p10 }
  0x73   :  { %v484_v5 = vsub.s32 0, %v483_v59  ;;  %v488_v28 = vsub.s32 1, %v483_v59 }
  0x74   :  { %2878 = vmatpush1.bf16.msra.mxu0 %v4330_v14 }
  0x75   :  { %2910 = vmatpush1.bf16.msra.mxu1 %v4334_v3  ;;  %2880 = vmatprep.subr.bf16.mxu0 %v4336_v15  ;;  %v4390_v32 = vrot.slane %v193_v24, %v484_v5  ;;  %v4392_v29 = vrot.slane %v193_v24, %v488_v28 }
  0x76   :  { %2912 = vmatprep.subr.bf16.mxu1 %v4339_v46 }
  0x77   :  { %5016 = vst [vmem:[#allocation45_spill] sm:$0xff] %v4390_v32 }
  0x78   :  { %2882 = vmatpush1.bf16.msra.mxu0 %v4342_v58 }
  0x79   :  { %2914 = vmatpush1.bf16.msra.mxu1 %v4346_v56  ;;  %2916 = vmatprep.subr.bf16.mxu0 %v4155_v4 }
  0x7a   :  { %2948 = vmatprep.subr.bf16.mxu1 %v4157_v8 }
  0x7b   :  { %404 = vmatmul.mubr.f32.vlgmr.msra.gmra.mrb[0].mxu0 %v196_v62 }
  0x7c   :  { %475 = vmatmul.mubr.f32.vlgmr.msra.gmra.mrb[0].mxu1 %v196_v62  ;;  %2918 = vmatpush1.bf16.msra.mxu0 %v4159_v9  ;;  %v496_v62 = vsub.s32 3, %v483_v59 }
  0x7d   :  { %2950 = vmatpush1.bf16.msra.mxu1 %v4162_v13  ;;  %2920 = vmatprep.subr.bf16.mxu0 %v4166_v17 }
  0x7e   :  { %2952 = vmatprep.subr.bf16.mxu1 %v4168_v18  ;;  %597 = vmatprep.mubr.f32.mxu0 %v5015_v45 }
  0x7f   :  { %668 = vmatprep.mubr.f32.mxu1 %v5015_v45 }
  0x80   :  { %2922 = vmatpush1.bf16.msra.mxu0 %v4171_v22 }
  0x81   :  { %2954 = vmatpush1.bf16.msra.mxu1 %v4175_v26  ;;  %2924 = vmatprep.subr.bf16.mxu0 %v4177_v27 }
  0x82   :  { %2956 = vmatprep.subr.bf16.mxu1 %v4179_v31 }
  0x84   :  { %2926 = vmatpush1.bf16.msra.mxu0 %v4182_v35 }
  0x85   :  { %2958 = vmatpush1.bf16.msra.mxu1 %v4186_v39  ;;  %2928 = vmatprep.subr.bf16.mxu0 %v4188_v40 }
  0x86   :  { %2960 = vmatprep.subr.bf16.mxu1 %v4191_v44 }
  0x88   :  { %2930 = vmatpush1.bf16.msra.mxu0 %v4194_v51 }
  0x89   :  { %2962 = vmatpush1.bf16.msra.mxu1 %v4198_v52  ;;  %2932 = vmatprep.subr.bf16.mxu0 %v4200_v53 }
  0x8a   :  { %2964 = vmatprep.subr.bf16.mxu1 %v4203_v57 }
  0x8c   :  { %2934 = vmatpush1.bf16.msra.mxu0 %v4206_v63 }
  0x8d   :  { %2966 = vmatpush1.bf16.msra.mxu1 %v4210_v1  ;;  %2936 = vmatprep.subr.bf16.mxu0 %v4212_v2 }
  0x8e   :  { %2968 = vmatprep.subr.bf16.mxu1 %v4215_v7 }
  0x90   :  { %2938 = vmatpush1.bf16.msra.mxu0 %v4218_v16 }
  0x91   :  { %2970 = vmatpush1.bf16.msra.mxu1 %v4222_v19  ;;  %2940 = vmatprep.subr.bf16.mxu0 %v4224_v20 }
  0x92   :  { %2972 = vmatprep.subr.bf16.mxu1 %v4227_v25 }
  0x94   :  { %2942 = vmatpush1.bf16.msra.mxu0 %v4230_v34  ;;  %v492_v34 = vsub.s32 2, %v483_v59 }
  0x95   :  { %2974 = vmatpush1.bf16.msra.mxu1 %v4234_v36  ;;  %2944 = vmatprep.subr.bf16.mxu0 %v4236_v37  ;;  %v4396_v36 = vrot.slane %v193_v24, %v496_v62 }
  0x96   :  { %2976 = vmatprep.subr.bf16.mxu1 %v4239_v43  ;;  %v4399_v28 = vrot.slane %v193_v24, %v492_v34 }
  0x98   :  { %2946 = vmatpush1.bf16.msra.mxu0 %v4242_v50 }
  0x99   :  { %2978 = vmatpush1.bf16.msra.mxu1 %v4246_v54  ;;  %2980 = vmatprep.subr.bf16.mxu0 %v4248_v55 }
  0x9a   :  { %3012 = vmatprep.subr.bf16.mxu1 %v4251_v60 }
 0x14e   :  { %v405_v48 = vpop.f32.mrb[0].mxu0 }
 0x14f   :  { %v502_v54 = vadd.f32 %v4390_v32, %v405_v48  ;;  %v476_v50 = vpop.f32.mrb[0].mxu1  ;;  %v407_v55 = vpop.f32.mrb[1].mxu0 }
 0x150   :  { %v503_v60 = vadd.f32 %v4392_v29, %v407_v55  ;;  %v478_v43 = vpop.f32.mrb[1].mxu1  ;;  %v504_v20 = vadd.f32 %v4399_v28, %v476_v50 }
 0x151   :  { %v2763_v30 = vmul.f32 -1.442695, %v502_v54  ;;  %v505_v5 = vadd.f32 %v4396_v36, %v478_v43 }
 0x152   :  { %v2764_v37 = vmul.f32 -1.442695, %v503_v60 }
 0x153   :  { %3852 = vpow2.f32 %v2763_v30  ;;  %v2765_v25 = vmul.f32 -1.442695, %v505_v5 }
 0x154   :  { %3854 = vpow2.f32 %v2764_v37 }
 0x155   :  { %3856 = vpow2.f32 %v2765_v25  ;;  %v5019_v25 = vld [vmem:[#allocation37_spill] sm:$0xff] }
 0x156   :  { %3858 = vtanh.f32 %v504_v20  ;;  %v5018_v20 = vld [vmem:[#allocation36_spill] sm:$0xff] }
 0x15d   :  { %v3853_v48 = vpop.eup %3852 }
 0x15e   :  { %v3855_v32 = vpop.eup %3854  ;;  %v509_v19 = vadd.f32 1.0, %v3853_v48  ;;  %v5021_v48 = vld [vmem:[#allocation39_spill] sm:$0xff] }
 0x15f   :  { %v515_v55 = vadd.f32 1.0, %v3855_v32  ;;  %v3857_v54 = vpop.eup %3856  ;;  %v5020_v32 = vld [vmem:[#allocation38_spill] sm:$0xff] }
 0x160   :  { %3860 = vrcp.f32 %v509_v19  ;;  %v3859_v60 = vpop.eup %3858  ;;  %v522_v30 = vadd.f32 1.0, %v3857_v54  ;;  %v5017_v19 = vld [vmem:[#allocation35_spill] sm:$0xff]  ;;  %v5023_v54 = vld [vmem:[#allocation41_spill] sm:$0xff] }
 0x161   :  { %3862 = vrcp.f32 %v515_v55  ;;  %v5022_v55 = vld [vmem:[#allocation40_spill] sm:$0xff] }
 0x162   :  { %3864 = vrcp.f32 %v522_v30  ;;  %v5027_v30 = vld [vmem:[#allocation24_spill] sm:$0xff] }
 0x16a   :  { %v3861_v62 = vpop.eup %3860 }
 0x16b   :  { %v3863_v59 = vpop.eup %3862  ;;  %v526_v37 = vmul.f32 %v3861_v62, %v3859_v60  ;;  %v5024_v60 = vld [vmem:[#allocation42_spill] sm:$0xff]  ;;  %v5025_v62 = vld [vmem:[#allocation43_spill] sm:$0xff] }
 0x16c   :  { %v525_v43 = vmul.f32 0.0, %v3863_v59  ;;  %v3865_v50 = vpop.eup %3864  ;;  %v5026_v59 = vld [vmem:[#allocation44_spill] sm:$0xff] }
 0x16e   :  { %v4402_v34 = vadd.f32 %v526_v37, %v525_v43  ;;  %v532_v37 = vld [vmem:[#allocation4 + $0x8] sm:$0xff]  ;;  %v5028_v43 = vld [vmem:[#allocation25_spill] sm:$0xff] }
 0x170   :  { %3866 = vtanh.f32 %v4402_v34 }
 0x17a   :  { %v3867_v24 = vpop.eup %3866 }
 0x17b   :  { %v529_v5 = vmul.f32 %v3867_v24, %v3865_v50  ;;  %v5029_v50 = vld [vmem:[#allocation26_spill] sm:$0xff]  ;;  %v5030_v24 = vld [vmem:[#allocation27_spill] sm:$0xff] }
 0x17d   :  { %530 = vst [vmem:[#allocation10] sm:$0xff] %v529_v5  ;;  %598 = vmatmul.mubr.f32.vlgmr.msra.gmra.mrb[2].mxu0 %v529_v5  ;;  %669 = vmatmul.mubr.f32.vlgmr.msra.gmra.mrb[2].mxu1 %v529_v5  ;;  %v5031_v5 = vld [vmem:[#allocation28_spill] sm:$0xff] }
 0x17e   :  { %2982 = vmatpush1.bf16.msra.mxu0 %v4254_v10  ;;  %3014 = vmatpush1.bf16.msra.mxu1 %v4258_v11 }
 0x17f   :  { %2984 = vmatprep.subr.bf16.mxu0 %v4260_v12  ;;  %3016 = vmatprep.subr.bf16.mxu1 %v4263_v23 }
 0x180   :  { %739 = vmatprep.mubr.f32.mxu0 %v5015_v45  ;;  %810 = vmatprep.mubr.f32.mxu1 %v5015_v45 }
 0x182   :  { %2986 = vmatpush1.bf16.msra.mxu0 %v4268_v33  ;;  %3018 = vmatpush1.bf16.msra.mxu1 %v4272_v38 }
 0x183   :  { %2988 = vmatprep.subr.bf16.mxu0 %v4274_v41  ;;  %3020 = vmatprep.subr.bf16.mxu1 %v4277_v47 }
 0x186   :  { %2990 = vmatpush1.bf16.msra.mxu0 %v4282_v61  ;;  %3022 = vmatpush1.bf16.msra.mxu1 %v5017_v19 }
 0x187   :  { %2992 = vmatprep.subr.bf16.mxu0 %v5018_v20  ;;  %3024 = vmatprep.subr.bf16.mxu1 %v5019_v25 }
 0x18a   :  { %2994 = vmatpush1.bf16.msra.mxu0 %v5020_v32  ;;  %3026 = vmatpush1.bf16.msra.mxu1 %v5021_v48 }
 0x18b   :  { %2996 = vmatprep.subr.bf16.mxu0 %v5022_v55  ;;  %3028 = vmatprep.subr.bf16.mxu1 %v5023_v54 }
 0x18e   :  { %2998 = vmatpush1.bf16.msra.mxu0 %v5024_v60  ;;  %3030 = vmatpush1.bf16.msra.mxu1 %v5025_v62 }
 0x18f   :  { %3000 = vmatprep.subr.bf16.mxu0 %v4312_v21  ;;  %3032 = vmatprep.subr.bf16.mxu1 %v5026_v59 }
 0x192   :  { %3002 = vmatpush1.bf16.msra.mxu0 %v4318_v42  ;;  %3034 = vmatpush1.bf16.msra.mxu1 %v4322_v0 }
 0x193   :  { %3004 = vmatprep.subr.bf16.mxu0 %v4324_v49  ;;  %3036 = vmatprep.subr.bf16.mxu1 %v4327_v6 }
 0x196   :  { %3006 = vmatpush1.bf16.msra.mxu0 %v4330_v14  ;;  %3038 = vmatpush1.bf16.msra.mxu1 %v4334_v3 }
 0x197   :  { %3008 = vmatprep.subr.bf16.mxu0 %v4336_v15  ;;  %3040 = vmatprep.subr.bf16.mxu1 %v4339_v46 }
 0x19a   :  { %3010 = vmatpush1.bf16.msra.mxu0 %v4342_v58  ;;  %3042 = vmatpush1.bf16.msra.mxu1 %v4346_v56 }
 0x19b   :  { %3044 = vmatprep.subr.bf16.mxu0 %v4155_v4  ;;  %3076 = vmatprep.subr.bf16.mxu1 %v4157_v8 }
 0x19d   :  { %740 = vmatmul.mubr.f32.vlgmr.msra.gmra.mrb[2].mxu0 %v532_v37  ;;  %811 = vmatmul.mubr.f32.vlgmr.msra.gmra.mrb[2].mxu1 %v532_v37  ;;  %v5032_v37 = vld [vmem:[#allocation29_spill] sm:$0xff] }
 0x19e   :  { %3046 = vmatpush1.bf16.msra.mxu0 %v4159_v9  ;;  %3078 = vmatpush1.bf16.msra.mxu1 %v4162_v13 }
 0x19f   :  { %3048 = vmatprep.subr.bf16.mxu0 %v4166_v17  ;;  %3080 = vmatprep.subr.bf16.mxu1 %v4168_v18 }
 0x1a0   :  { %913 = vmatprep.mubr.f32.mxu0 %v5015_v45  ;;  %984 = vmatprep.mubr.f32.mxu1 %v5015_v45 }
 0x1a2   :  { %3050 = vmatpush1.bf16.msra.mxu0 %v4171_v22  ;;  %3082 = vmatpush1.bf16.msra.mxu1 %v4175_v26 }
 0x1a3   :  { %3052 = vmatprep.subr.bf16.mxu0 %v4177_v27  ;;  %3084 = vmatprep.subr.bf16.mxu1 %v4179_v31 }
 0x1a6   :  { %3054 = vmatpush1.bf16.msra.mxu0 %v4182_v35  ;;  %3086 = vmatpush1.bf16.msra.mxu1 %v4186_v39 }
 0x1a7   :  { %3056 = vmatprep.subr.bf16.mxu0 %v4188_v40  ;;  %3088 = vmatprep.subr.bf16.mxu1 %v4191_v44 }
 0x1aa   :  { %3058 = vmatpush1.bf16.msra.mxu0 %v4194_v51  ;;  %3090 = vmatpush1.bf16.msra.mxu1 %v4198_v52 }
 0x1ab   :  { %3060 = vmatprep.subr.bf16.mxu0 %v4200_v53  ;;  %3092 = vmatprep.subr.bf16.mxu1 %v4203_v57  ;;  %v5038_v57 = vld [vmem:[#allocation45_spill] sm:$0xff] }
 0x1ae   :  { %3062 = vmatpush1.bf16.msra.mxu0 %v4206_v63  ;;  %3094 = vmatpush1.bf16.msra.mxu1 %v4210_v1  ;;  %v5033_v63 = vld [vmem:[#allocation30_spill] sm:$0xff]  ;;  %v5034_v1 = vld [vmem:[#allocation31_spill] sm:$0xff] }
 0x1af   :  { %3064 = vmatprep.subr.bf16.mxu0 %v4212_v2  ;;  %3096 = vmatprep.subr.bf16.mxu1 %v4215_v7  ;;  %v5035_v2 = vld [vmem:[#allocation32_spill] sm:$0xff]  ;;  %v5036_v7 = vld [vmem:[#allocation33_spill] sm:$0xff] }
 0x1b2   :  { %3066 = vmatpush1.bf16.msra.mxu0 %v4218_v16  ;;  %3098 = vmatpush1.bf16.msra.mxu1 %v5027_v30  ;;  %v5037_v16 = vld [vmem:[#allocation34_spill] sm:$0xff] }
 0x1b3   :  { %3068 = vmatprep.subr.bf16.mxu0 %v5028_v43  ;;  %3100 = vmatprep.subr.bf16.mxu1 %v5029_v50 }
 0x1b6   :  { %3070 = vmatpush1.bf16.msra.mxu0 %v5030_v24  ;;  %3102 = vmatpush1.bf16.msra.mxu1 %v5031_v5 }
 0x1b7   :  { %3072 = vmatprep.subr.bf16.mxu0 %v5032_v37  ;;  %3104 = vmatprep.subr.bf16.mxu1 %v5033_v63 }
 0x1ba   :  { %3074 = vmatpush1.bf16.msra.mxu0 %v5034_v1  ;;  %3106 = vmatpush1.bf16.msra.mxu1 %v5035_v2 }
 0x1bb   :  { %3108 = vmatprep.subr.bf16.mxu0 %v5036_v7  ;;  %3140 = vmatprep.subr.bf16.mxu1 %v5037_v16 }
 0x270   :  { %v741_v30 = vpop.f32.mrb[2].mxu0  ;;  %v812_v43 = vpop.f32.mrb[2].mxu1 }
 0x271   :  { %v817_v50 = vadd.f32 %v741_v30, %v5038_v57  ;;  %v743_v53 = vpop.f32.mrb[3].mxu0  ;;  %v814_v24 = vpop.f32.mrb[3].mxu1  ;;  %v819_v2 = vadd.f32 %v812_v43, %v4399_v28  ;;  %v5044_v43 = vld [vmem:[#allocation19_spill] sm:$0xff] }
 0x272   :  { %v818_v5 = vadd.f32 %v743_v53, %v4392_v29  ;;  %v820_v1 = vadd.f32 %v814_v24, %v4396_v36 }
 0x273   :  { %v2766_v52 = vmul.f32 -1.442695, %v817_v50 }
 0x274   :  { %v2767_v37 = vmul.f32 -1.442695, %v818_v5  ;;  %v2768_v63 = vmul.f32 -1.442695, %v820_v1 }
 0x275   :  { %3868 = vpow2.f32 %v2766_v52 }
 0x276   :  { %3870 = vpow2.f32 %v2767_v37 }
 0x277   :  { %3872 = vpow2.f32 %v2768_v63 }
 0x278   :  { %3874 = vtanh.f32 %v819_v2  ;;  %v5041_v2 = vld [vmem:[#allocation16_spill] sm:$0xff] }
 0x27f   :  { %v3869_v7 = vpop.eup %3868 }
 0x280   :  { %v3871_v51 = vpop.eup %3870  ;;  %v824_v16 = vadd.f32 1.0, %v3869_v7 }
 0x281   :  { %v830_v44 = vadd.f32 1.0, %v3871_v51  ;;  %v3873_v30 = vpop.eup %3872  ;;  %v5039_v51 = vld [vmem:[#allocation14_spill] sm:$0xff] }
 0x282   :  { %3876 = vrcp.f32 %v824_v16  ;;  %v3875_v57 = vpop.eup %3874  ;;  %v837_v52 = vadd.f32 1.0, %v3873_v30  ;;  %v5042_v16 = vld [vmem:[#allocation17_spill] sm:$0xff]  ;;  %v5045_v30 = vld [vmem:[#allocation20_spill] sm:$0xff] }
 0x283   :  { %3878 = vrcp.f32 %v830_v44  ;;  %v848_v44 = vld [vmem:[#allocation4 + $0x10] sm:$0xff] }
 0x284   :  { %3880 = vrcp.f32 %v837_v52  ;;  %v5049_v52 = vld [vmem:[#allocation24_spill] sm:$0xff] }
 0x28c   :  { %v3877_v53 = vpop.eup %3876 }
 0x28d   :  { %v3879_v50 = vpop.eup %3878  ;;  %v841_v5 = vmul.f32 %v3877_v53, %v3875_v57  ;;  %v5040_v57 = vld [vmem:[#allocation15_spill] sm:$0xff]  ;;  %v5046_v53 = vld [vmem:[#allocation21_spill] sm:$0xff] }
 0x28e   :  { %v840_v37 = vmul.f32 %v3879_v50, %v4402_v34  ;;  %v3881_v1 = vpop.eup %3880  ;;  %v5043_v34 = vld [vmem:[#allocation18_spill] sm:$0xff] }
 0x28f   :  { %v5047_v50 = vld [vmem:[#allocation22_spill] sm:$0xff] }
 0x290   :  { %v4478_v24 = vadd.f32 %v841_v5, %v840_v37  ;;  %v5048_v5 = vld [vmem:[#allocation23_spill] sm:$0xff]  ;;  %v5050_v37 = vld [vmem:[#allocation25_spill] sm:$0xff] }
 0x292   :  { %3882 = vtanh.f32 %v4478_v24 }
 0x29c   :  { %v3883_v7 = vpop.eup %3882 }
 0x29d   :  { %v844_v63 = vmul.f32 %v3883_v7, %v3881_v1  ;;  %v5051_v1 = vld [vmem:[#allocation26_spill] sm:$0xff]  ;;  %v5052_v7 = vld [vmem:[#allocation27_spill] sm:$0xff] }
 0x29f   :  { %846 = vst [vmem:[#allocation10 + $0x8] sm:$0xff] %v844_v63  ;;  %914 = vmatmul.mubr.f32.vlgmr.msra.gmra.mrb[4].mxu0 %v844_v63  ;;  %985 = vmatmul.mubr.f32.vlgmr.msra.gmra.mrb[4].mxu1 %v844_v63  ;;  %v5053_v63 = vld [vmem:[#allocation28_spill] sm:$0xff] }
 0x2a0   :  { %3110 = vmatpush1.bf16.msra.mxu0 %v4254_v10  ;;  %3142 = vmatpush1.bf16.msra.mxu1 %v4258_v11 }
 0x2a1   :  { %3112 = vmatprep.subr.bf16.mxu0 %v4260_v12  ;;  %3144 = vmatprep.subr.bf16.mxu1 %v4263_v23 }
 0x2a2   :  { %1055 = vmatprep.mubr.f32.mxu0 %v5015_v45  ;;  %1126 = vmatprep.mubr.f32.mxu1 %v5015_v45 }
 0x2a4   :  { %3114 = vmatpush1.bf16.msra.mxu0 %v4268_v33  ;;  %3146 = vmatpush1.bf16.msra.mxu1 %v4272_v38 }
 0x2a5   :  { %3116 = vmatprep.subr.bf16.mxu0 %v4274_v41  ;;  %3148 = vmatprep.subr.bf16.mxu1 %v4277_v47 }
 0x2a8   :  { %3118 = vmatpush1.bf16.msra.mxu0 %v4282_v61  ;;  %3150 = vmatpush1.bf16.msra.mxu1 %v5017_v19 }
 0x2a9   :  { %3120 = vmatprep.subr.bf16.mxu0 %v5018_v20  ;;  %3152 = vmatprep.subr.bf16.mxu1 %v5019_v25 }
 0x2ac   :  { %3122 = vmatpush1.bf16.msra.mxu0 %v5020_v32  ;;  %3154 = vmatpush1.bf16.msra.mxu1 %v5021_v48 }
 0x2ad   :  { %3124 = vmatprep.subr.bf16.mxu0 %v5022_v55  ;;  %3156 = vmatprep.subr.bf16.mxu1 %v5023_v54 }
 0x2b0   :  { %3126 = vmatpush1.bf16.msra.mxu0 %v5024_v60  ;;  %3158 = vmatpush1.bf16.msra.mxu1 %v5025_v62 }
 0x2b1   :  { %3128 = vmatprep.subr.bf16.mxu0 %v4312_v21  ;;  %3160 = vmatprep.subr.bf16.mxu1 %v5026_v59 }
 0x2b4   :  { %3130 = vmatpush1.bf16.msra.mxu0 %v4318_v42  ;;  %3162 = vmatpush1.bf16.msra.mxu1 %v4322_v0 }
 0x2b5   :  { %3132 = vmatprep.subr.bf16.mxu0 %v4324_v49  ;;  %3164 = vmatprep.subr.bf16.mxu1 %v4327_v6 }
 0x2b8   :  { %3134 = vmatpush1.bf16.msra.mxu0 %v4330_v14  ;;  %3166 = vmatpush1.bf16.msra.mxu1 %v4334_v3 }
 0x2b9   :  { %3136 = vmatprep.subr.bf16.mxu0 %v4336_v15  ;;  %3168 = vmatprep.subr.bf16.mxu1 %v4339_v46 }
 0x2bc   :  { %3138 = vmatpush1.bf16.msra.mxu0 %v4342_v58  ;;  %3170 = vmatpush1.bf16.msra.mxu1 %v4346_v56 }
 0x2bd   :  { %3172 = vmatprep.subr.bf16.mxu0 %v4155_v4  ;;  %3204 = vmatprep.subr.bf16.mxu1 %v4157_v8 }
 0x2bf   :  { %1056 = vmatmul.mubr.f32.vlgmr.msra.gmra.mrb[4].mxu0 %v848_v44  ;;  %1127 = vmatmul.mubr.f32.vlgmr.msra.gmra.mrb[4].mxu1 %v848_v44  ;;  %v5054_v44 = vld [vmem:[#allocation29_spill] sm:$0xff] }
 0x2c0   :  { %3174 = vmatpush1.bf16.msra.mxu0 %v4159_v9  ;;  %3206 = vmatpush1.bf16.msra.mxu1 %v4162_v13 }
 0x2c1   :  { %3176 = vmatprep.subr.bf16.mxu0 %v4166_v17  ;;  %3208 = vmatprep.subr.bf16.mxu1 %v4168_v18 }
 0x2c2   :  { %1229 = vmatprep.mubr.f32.mxu0 %v5015_v45  ;;  %1300 = vmatprep.mubr.f32.mxu1 %v5015_v45 }
 0x2c4   :  { %3178 = vmatpush1.bf16.msra.mxu0 %v4171_v22  ;;  %3210 = vmatpush1.bf16.msra.mxu1 %v4175_v26 }
 0x2c5   :  { %3180 = vmatprep.subr.bf16.mxu0 %v4177_v27  ;;  %3212 = vmatprep.subr.bf16.mxu1 %v4179_v31 }
 0x2c8   :  { %3182 = vmatpush1.bf16.msra.mxu0 %v4182_v35  ;;  %3214 = vmatpush1.bf16.msra.mxu1 %v4186_v39 }
 0x2c9   :  { %3184 = vmatprep.subr.bf16.mxu0 %v4188_v40  ;;  %3216 = vmatprep.subr.bf16.mxu1 %v5039_v51 }
 0x2cc   :  { %3186 = vmatpush1.bf16.msra.mxu0 %v5040_v57  ;;  %3218 = vmatpush1.bf16.msra.mxu1 %v5041_v2 }
 0x2cd   :  { %3188 = vmatprep.subr.bf16.mxu0 %v5042_v16  ;;  %3220 = vmatprep.subr.bf16.mxu1 %v5043_v34  ;;  %v5060_v34 = vld [vmem:[#allocation45_spill] sm:$0xff] }
 0x2d0   :  { %3190 = vmatpush1.bf16.msra.mxu0 %v5044_v43  ;;  %3222 = vmatpush1.bf16.msra.mxu1 %v5045_v30  ;;  %v5055_v43 = vld [vmem:[#allocation30_spill] sm:$0xff]  ;;  %v5056_v30 = vld [vmem:[#allocation31_spill] sm:$0xff] }
 0x2d1   :  { %3192 = vmatprep.subr.bf16.mxu0 %v5046_v53  ;;  %3224 = vmatprep.subr.bf16.mxu1 %v5047_v50  ;;  %v5057_v53 = vld [vmem:[#allocation32_spill] sm:$0xff]  ;;  %v5058_v50 = vld [vmem:[#allocation33_spill] sm:$0xff] }
 0x2d4   :  { %3194 = vmatpush1.bf16.msra.mxu0 %v5048_v5  ;;  %3226 = vmatpush1.bf16.msra.mxu1 %v5049_v52  ;;  %v5059_v5 = vld [vmem:[#allocation34_spill] sm:$0xff] }
 0x2d5   :  { %3196 = vmatprep.subr.bf16.mxu0 %v5050_v37  ;;  %3228 = vmatprep.subr.bf16.mxu1 %v5051_v1 }
 0x2d8   :  { %3198 = vmatpush1.bf16.msra.mxu0 %v5052_v7  ;;  %3230 = vmatpush1.bf16.msra.mxu1 %v5053_v63 }
 0x2d9   :  { %3200 = vmatprep.subr.bf16.mxu0 %v5054_v44  ;;  %3232 = vmatprep.subr.bf16.mxu1 %v5055_v43 }
 0x2dc   :  { %3202 = vmatpush1.bf16.msra.mxu0 %v5056_v30  ;;  %3234 = vmatpush1.bf16.msra.mxu1 %v5057_v53 }
 0x2dd   :  { %3236 = vmatprep.subr.bf16.mxu0 %v5058_v50  ;;  %3268 = vmatprep.subr.bf16.mxu1 %v5059_v5 }
 0x392   :  { %v1057_v52 = vpop.f32.mrb[4].mxu0  ;;  %v1128_v37 = vpop.f32.mrb[4].mxu1 }
 0x393   :  { %v1133_v1 = vadd.f32 %v1057_v52, %v5060_v34  ;;  %v1059_v16 = vpop.f32.mrb[5].mxu0  ;;  %v1130_v7 = vpop.f32.mrb[5].mxu1  ;;  %v1135_v53 = vadd.f32 %v1128_v37, %v4399_v28  ;;  %v5066_v37 = vld [vmem:[#allocation19_spill] sm:$0xff] }
 0x394   :  { %v1134_v63 = vadd.f32 %v1059_v16, %v4392_v29  ;;  %v1136_v30 = vadd.f32 %v1130_v7, %v4396_v36 }
 0x395   :  { %v2769_v2 = vmul.f32 -1.442695, %v1133_v1 }
 0x396   :  { %v2770_v44 = vmul.f32 -1.442695, %v1134_v63  ;;  %v2771_v43 = vmul.f32 -1.442695, %v1136_v30 }
 0x397   :  { %3884 = vpow2.f32 %v2769_v2 }
 0x398   :  { %3886 = vpow2.f32 %v2770_v44 }
 0x399   :  { %3888 = vpow2.f32 %v2771_v43 }
 0x39a   :  { %3890 = vtanh.f32 %v1135_v53  ;;  %v5064_v53 = vld [vmem:[#allocation17_spill] sm:$0xff] }
 0x3a1   :  { %v3885_v50 = vpop.eup %3884 }
 0x3a2   :  { %v3887_v57 = vpop.eup %3886  ;;  %v1140_v5 = vadd.f32 1.0, %v3885_v50 }
 0x3a3   :  { %v1146_v51 = vadd.f32 1.0, %v3887_v57  ;;  %v3889_v52 = vpop.eup %3888  ;;  %v5062_v57 = vld [vmem:[#allocation15_spill] sm:$0xff] }
 0x3a4   :  { %3892 = vrcp.f32 %v1140_v5  ;;  %v3891_v34 = vpop.eup %3890  ;;  %v1153_v2 = vadd.f32 1.0, %v3889_v52  ;;  %v5065_v5 = vld [vmem:[#allocation18_spill] sm:$0xff]  ;;  %v5067_v52 = vld [vmem:[#allocation20_spill] sm:$0xff] }
 0x3a5   :  { %3894 = vrcp.f32 %v1146_v51  ;;  %v5061_v51 = vld [vmem:[#allocation14_spill] sm:$0xff] }
 0x3a6   :  { %3896 = vrcp.f32 %v1153_v2  ;;  %v5071_v2 = vld [vmem:[#allocation24_spill] sm:$0xff] }
 0x3ae   :  { %v3893_v16 = vpop.eup %3892 }
 0x3af   :  { %v3895_v1 = vpop.eup %3894  ;;  %v1157_v63 = vmul.f32 %v3893_v16, %v3891_v34  ;;  %v5063_v34 = vld [vmem:[#allocation16_spill] sm:$0xff]  ;;  %v5068_v16 = vld [vmem:[#allocation21_spill] sm:$0xff] }
 0x3b0   :  { %v1156_v44 = vmul.f32 %v3895_v1, %v4478_v24  ;;  %v3897_v30 = vpop.eup %3896  ;;  %v1164_v24 = vld [vmem:[#allocation4 + $0x18] sm:$0xff]  ;;  %v5069_v1 = vld [vmem:[#allocation22_spill] sm:$0xff] }
 0x3b2   :  { %v4554_v7 = vadd.f32 %v1157_v63, %v1156_v44  ;;  %v5070_v63 = vld [vmem:[#allocation23_spill] sm:$0xff]  ;;  %v5072_v44 = vld [vmem:[#allocation25_spill] sm:$0xff] }
 0x3b4   :  { %3898 = vtanh.f32 %v4554_v7 }
 0x3be   :  { %v3899_v50 = vpop.eup %3898 }
 0x3bf   :  { %v1160_v43 = vmul.f32 %v3899_v50, %v3897_v30  ;;  %v5073_v30 = vld [vmem:[#allocation26_spill] sm:$0xff]  ;;  %v5074_v50 = vld [vmem:[#allocation27_spill] sm:$0xff] }
 0x3c1   :  { %1162 = vst [vmem:[#allocation10 + $0x10] sm:$0xff] %v1160_v43  ;;  %1230 = vmatmul.mubr.f32.vlgmr.msra.gmra.mrb[6].mxu0 %v1160_v43  ;;  %1301 = vmatmul.mubr.f32.vlgmr.msra.gmra.mrb[6].mxu1 %v1160_v43  ;;  %v5075_v43 = vld [vmem:[#allocation28_spill] sm:$0xff] }
 0x3c2   :  { %3238 = vmatpush1.bf16.msra.mxu0 %v4254_v10  ;;  %3270 = vmatpush1.bf16.msra.mxu1 %v4258_v11 }
 0x3c3   :  { %3240 = vmatprep.subr.bf16.mxu0 %v4260_v12  ;;  %3272 = vmatprep.subr.bf16.mxu1 %v4263_v23 }
 0x3c4   :  { %1371 = vmatprep.mubr.f32.mxu0 %v5015_v45  ;;  %1442 = vmatprep.mubr.f32.mxu1 %v5015_v45 }
 0x3c6   :  { %3242 = vmatpush1.bf16.msra.mxu0 %v4268_v33  ;;  %3274 = vmatpush1.bf16.msra.mxu1 %v4272_v38 }
 0x3c7   :  { %3244 = vmatprep.subr.bf16.mxu0 %v4274_v41  ;;  %3276 = vmatprep.subr.bf16.mxu1 %v4277_v47 }
 0x3ca   :  { %3246 = vmatpush1.bf16.msra.mxu0 %v4282_v61  ;;  %3278 = vmatpush1.bf16.msra.mxu1 %v5017_v19 }
 0x3cb   :  { %3248 = vmatprep.subr.bf16.mxu0 %v5018_v20  ;;  %3280 = vmatprep.subr.bf16.mxu1 %v5019_v25 }
 0x3ce   :  { %3250 = vmatpush1.bf16.msra.mxu0 %v5020_v32  ;;  %3282 = vmatpush1.bf16.msra.mxu1 %v5021_v48 }
 0x3cf   :  { %3252 = vmatprep.subr.bf16.mxu0 %v5022_v55  ;;  %3284 = vmatprep.subr.bf16.mxu1 %v5023_v54 }
 0x3d2   :  { %3254 = vmatpush1.bf16.msra.mxu0 %v5024_v60  ;;  %3286 = vmatpush1.bf16.msra.mxu1 %v5025_v62 }
 0x3d3   :  { %3256 = vmatprep.subr.bf16.mxu0 %v4312_v21  ;;  %3288 = vmatprep.subr.bf16.mxu1 %v5026_v59 }
 0x3d6   :  { %3258 = vmatpush1.bf16.msra.mxu0 %v4318_v42  ;;  %3290 = vmatpush1.bf16.msra.mxu1 %v4322_v0 }
 0x3d7   :  { %3260 = vmatprep.subr.bf16.mxu0 %v4324_v49  ;;  %3292 = vmatprep.subr.bf16.mxu1 %v4327_v6 }
 0x3da   :  { %3262 = vmatpush1.bf16.msra.mxu0 %v4330_v14  ;;  %3294 = vmatpush1.bf16.msra.mxu1 %v4334_v3 }
 0x3db   :  { %3264 = vmatprep.subr.bf16.mxu0 %v4336_v15  ;;  %3296 = vmatprep.subr.bf16.mxu1 %v4339_v46 }
 0x3de   :  { %3266 = vmatpush1.bf16.msra.mxu0 %v4342_v58  ;;  %3298 = vmatpush1.bf16.msra.mxu1 %v4346_v56 }
 0x3df   :  { %3300 = vmatprep.subr.bf16.mxu0 %v4155_v4  ;;  %3332 = vmatprep.subr.bf16.mxu1 %v4157_v8 }
 0x3e1   :  { %1372 = vmatmul.mubr.f32.vlgmr.msra.gmra.mrb[6].mxu0 %v1164_v24  ;;  %1443 = vmatmul.mubr.f32.vlgmr.msra.gmra.mrb[6].mxu1 %v1164_v24  ;;  %v5076_v24 = vld [vmem:[#allocation29_spill] sm:$0xff] }
 0x3e2   :  { %3302 = vmatpush1.bf16.msra.mxu0 %v4159_v9  ;;  %3334 = vmatpush1.bf16.msra.mxu1 %v4162_v13 }
 0x3e3   :  { %3304 = vmatprep.subr.bf16.mxu0 %v4166_v17  ;;  %3336 = vmatprep.subr.bf16.mxu1 %v4168_v18 }
 0x3e4   :  { %1545 = vmatprep.mubr.f32.mxu0 %v5015_v45  ;;  %1616 = vmatprep.mubr.f32.mxu1 %v5015_v45 }
 0x3e6   :  { %3306 = vmatpush1.bf16.msra.mxu0 %v4171_v22  ;;  %3338 = vmatpush1.bf16.msra.mxu1 %v4175_v26 }
 0x3e7   :  { %3308 = vmatprep.subr.bf16.mxu0 %v4177_v27  ;;  %3340 = vmatprep.subr.bf16.mxu1 %v4179_v31 }
 0x3ea   :  { %3310 = vmatpush1.bf16.msra.mxu0 %v4182_v35  ;;  %3342 = vmatpush1.bf16.msra.mxu1 %v4186_v39 }
 0x3eb   :  { %3312 = vmatprep.subr.bf16.mxu0 %v4188_v40  ;;  %3344 = vmatprep.subr.bf16.mxu1 %v5061_v51 }
 0x3ee   :  { %3314 = vmatpush1.bf16.msra.mxu0 %v5062_v57  ;;  %3346 = vmatpush1.bf16.msra.mxu1 %v5063_v34 }
 0x3ef   :  { %3316 = vmatprep.subr.bf16.mxu0 %v5064_v53  ;;  %3348 = vmatprep.subr.bf16.mxu1 %v5065_v5  ;;  %v5082_v5 = vld [vmem:[#allocation45_spill] sm:$0xff] }
 0x3f2   :  { %3318 = vmatpush1.bf16.msra.mxu0 %v5066_v37  ;;  %3350 = vmatpush1.bf16.msra.mxu1 %v5067_v52  ;;  %v5077_v37 = vld [vmem:[#allocation30_spill] sm:$0xff]  ;;  %v5078_v52 = vld [vmem:[#allocation31_spill] sm:$0xff] }
 0x3f3   :  { %3320 = vmatprep.subr.bf16.mxu0 %v5068_v16  ;;  %3352 = vmatprep.subr.bf16.mxu1 %v5069_v1  ;;  %v5079_v16 = vld [vmem:[#allocation32_spill] sm:$0xff]  ;;  %v5080_v1 = vld [vmem:[#allocation33_spill] sm:$0xff] }
 0x3f6   :  { %3322 = vmatpush1.bf16.msra.mxu0 %v5070_v63  ;;  %3354 = vmatpush1.bf16.msra.mxu1 %v5071_v2  ;;  %v5081_v63 = vld [vmem:[#allocation34_spill] sm:$0xff] }
 0x3f7   :  { %3324 = vmatprep.subr.bf16.mxu0 %v5072_v44  ;;  %3356 = vmatprep.subr.bf16.mxu1 %v5073_v30 }
 0x3fa   :  { %3326 = vmatpush1.bf16.msra.mxu0 %v5074_v50  ;;  %3358 = vmatpush1.bf16.msra.mxu1 %v5075_v43 }
 0x3fb   :  { %3328 = vmatprep.subr.bf16.mxu0 %v5076_v24  ;;  %3360 = vmatprep.subr.bf16.mxu1 %v5077_v37 }
 0x3fe   :  { %3330 = vmatpush1.bf16.msra.mxu0 %v5078_v52  ;;  %3362 = vmatpush1.bf16.msra.mxu1 %v5079_v16 }
 0x3ff   :  { %3364 = vmatprep.subr.bf16.mxu0 %v5080_v1  ;;  %3396 = vmatprep.subr.bf16.mxu1 %v5081_v63 }
 0x4b4   :  { %v1373_v2 = vpop.f32.mrb[6].mxu0  ;;  %v1444_v44 = vpop.f32.mrb[6].mxu1 }
 0x4b5   :  { %v1449_v30 = vadd.f32 %v1373_v2, %v5082_v5  ;;  %v1375_v53 = vpop.f32.mrb[7].mxu0  ;;  %v1446_v50 = vpop.f32.mrb[7].mxu1  ;;  %v1451_v16 = vadd.f32 %v1444_v44, %v4399_v28  ;;  %v5088_v44 = vld [vmem:[#allocation19_spill] sm:$0xff] }
 0x4b6   :  { %v1450_v43 = vadd.f32 %v1375_v53, %v4392_v29  ;;  %v1452_v52 = vadd.f32 %v1446_v50, %v4396_v36 }
 0x4b7   :  { %v2772_v34 = vmul.f32 -1.442695, %v1449_v30 }
 0x4b8   :  { %v2773_v24 = vmul.f32 -1.442695, %v1450_v43  ;;  %v2774_v37 = vmul.f32 -1.442695, %v1452_v52 }
 0x4b9   :  { %3900 = vpow2.f32 %v2772_v34 }
 0x4ba   :  { %3902 = vpow2.f32 %v2773_v24 }
 0x4bb   :  { %3904 = vpow2.f32 %v2774_v37 }
 0x4bc   :  { %3906 = vtanh.f32 %v1451_v16  ;;  %v5086_v16 = vld [vmem:[#allocation17_spill] sm:$0xff] }
 0x4c3   :  { %v3901_v1 = vpop.eup %3900 }
 0x4c4   :  { %v3903_v57 = vpop.eup %3902  ;;  %v1456_v63 = vadd.f32 1.0, %v3901_v1 }
 0x4c5   :  { %v1462_v51 = vadd.f32 1.0, %v3903_v57  ;;  %v3905_v2 = vpop.eup %3904  ;;  %v5084_v57 = vld [vmem:[#allocation15_spill] sm:$0xff] }
 0x4c6   :  { %3908 = vrcp.f32 %v1456_v63  ;;  %v3907_v5 = vpop.eup %3906  ;;  %v1469_v34 = vadd.f32 1.0, %v3905_v2  ;;  %v5087_v63 = vld [vmem:[#allocation18_spill] sm:$0xff]  ;;  %v5089_v2 = vld [vmem:[#allocation20_spill] sm:$0xff] }
 0x4c7   :  { %3910 = vrcp.f32 %v1462_v51  ;;  %v5083_v51 = vld [vmem:[#allocation14_spill] sm:$0xff] }
 0x4c8   :  { %3912 = vrcp.f32 %v1469_v34  ;;  %v5093_v34 = vld [vmem:[#allocation24_spill] sm:$0xff] }
 0x4d0   :  { %v3909_v53 = vpop.eup %3908 }
 0x4d1   :  { %v3911_v30 = vpop.eup %3910  ;;  %v1473_v43 = vmul.f32 %v3909_v53, %v3907_v5  ;;  %v5085_v5 = vld [vmem:[#allocation16_spill] sm:$0xff]  ;;  %v5090_v53 = vld [vmem:[#allocation21_spill] sm:$0xff] }
 0x4d2   :  { %v1472_v24 = vmul.f32 %v3911_v30, %v4554_v7  ;;  %v3913_v52 = vpop.eup %3912  ;;  %v1480_v7 = vld [vmem:[#allocation4 + $0x20] sm:$0xff] }
 0x4d3   :  { %v5091_v30 = vld [vmem:[#allocation22_spill] sm:$0xff] }
 0x4d4   :  { %v4630_v50 = vadd.f32 %v1473_v43, %v1472_v24  ;;  %v5092_v43 = vld [vmem:[#allocation23_spill] sm:$0xff]  ;;  %v5094_v24 = vld [vmem:[#allocation25_spill] sm:$0xff] }
 0x4d6   :  { %3914 = vtanh.f32 %v4630_v50 }
 0x4e0   :  { %v3915_v1 = vpop.eup %3914 }
 0x4e1   :  { %v1476_v37 = vmul.f32 %v3915_v1, %v3913_v52  ;;  %v5095_v52 = vld [vmem:[#allocation26_spill] sm:$0xff]  ;;  %v5096_v1 = vld [vmem:[#allocation27_spill] sm:$0xff] }
 0x4e3   :  { %1478 = vst [vmem:[#allocation10 + $0x18] sm:$0xff] %v1476_v37  ;;  %1546 = vmatmul.mubr.f32.vlgmr.msra.gmra.mrb[8].mxu0 %v1476_v37  ;;  %1617 = vmatmul.mubr.f32.vlgmr.msra.gmra.mrb[8].mxu1 %v1476_v37  ;;  %v5097_v37 = vld [vmem:[#allocation28_spill] sm:$0xff] }
 0x4e4   :  { %3366 = vmatpush1.bf16.msra.mxu0 %v4254_v10  ;;  %3398 = vmatpush1.bf16.msra.mxu1 %v4258_v11 }
 0x4e5   :  { %3368 = vmatprep.subr.bf16.mxu0 %v4260_v12  ;;  %3400 = vmatprep.subr.bf16.mxu1 %v4263_v23 }
 0x4e6   :  { %1687 = vmatprep.mubr.f32.mxu0 %v5015_v45  ;;  %1758 = vmatprep.mubr.f32.mxu1 %v5015_v45 }
 0x4e8   :  { %3370 = vmatpush1.bf16.msra.mxu0 %v4268_v33  ;;  %3402 = vmatpush1.bf16.msra.mxu1 %v4272_v38 }
 0x4e9   :  { %3372 = vmatprep.subr.bf16.mxu0 %v4274_v41  ;;  %3404 = vmatprep.subr.bf16.mxu1 %v4277_v47 }
 0x4ec   :  { %3374 = vmatpush1.bf16.msra.mxu0 %v4282_v61  ;;  %3406 = vmatpush1.bf16.msra.mxu1 %v5017_v19 }
 0x4ed   :  { %3376 = vmatprep.subr.bf16.mxu0 %v5018_v20  ;;  %3408 = vmatprep.subr.bf16.mxu1 %v5019_v25 }
 0x4f0   :  { %3378 = vmatpush1.bf16.msra.mxu0 %v5020_v32  ;;  %3410 = vmatpush1.bf16.msra.mxu1 %v5021_v48 }
 0x4f1   :  { %3380 = vmatprep.subr.bf16.mxu0 %v5022_v55  ;;  %3412 = vmatprep.subr.bf16.mxu1 %v5023_v54 }
 0x4f4   :  { %3382 = vmatpush1.bf16.msra.mxu0 %v5024_v60  ;;  %3414 = vmatpush1.bf16.msra.mxu1 %v5025_v62 }
 0x4f5   :  { %3384 = vmatprep.subr.bf16.mxu0 %v4312_v21  ;;  %3416 = vmatprep.subr.bf16.mxu1 %v5026_v59 }
 0x4f8   :  { %3386 = vmatpush1.bf16.msra.mxu0 %v4318_v42  ;;  %3418 = vmatpush1.bf16.msra.mxu1 %v4322_v0 }
 0x4f9   :  { %3388 = vmatprep.subr.bf16.mxu0 %v4324_v49  ;;  %3420 = vmatprep.subr.bf16.mxu1 %v4327_v6 }
 0x4fc   :  { %3390 = vmatpush1.bf16.msra.mxu0 %v4330_v14  ;;  %3422 = vmatpush1.bf16.msra.mxu1 %v4334_v3 }
 0x4fd   :  { %3392 = vmatprep.subr.bf16.mxu0 %v4336_v15  ;;  %3424 = vmatprep.subr.bf16.mxu1 %v4339_v46 }
 0x500   :  { %3394 = vmatpush1.bf16.msra.mxu0 %v4342_v58  ;;  %3426 = vmatpush1.bf16.msra.mxu1 %v4346_v56 }
 0x501   :  { %3428 = vmatprep.subr.bf16.mxu0 %v4155_v4  ;;  %3460 = vmatprep.subr.bf16.mxu1 %v4157_v8 }
 0x503   :  { %1688 = vmatmul.mubr.f32.vlgmr.msra.gmra.mrb[8].mxu0 %v1480_v7  ;;  %1759 = vmatmul.mubr.f32.vlgmr.msra.gmra.mrb[8].mxu1 %v1480_v7  ;;  %v5098_v7 = vld [vmem:[#allocation29_spill] sm:$0xff] }
 0x504   :  { %3430 = vmatpush1.bf16.msra.mxu0 %v4159_v9  ;;  %3462 = vmatpush1.bf16.msra.mxu1 %v4162_v13 }
 0x505   :  { %3432 = vmatprep.subr.bf16.mxu0 %v4166_v17  ;;  %3464 = vmatprep.subr.bf16.mxu1 %v4168_v18 }
 0x506   :  { %1861 = vmatprep.mubr.f32.mxu0 %v5015_v45  ;;  %1932 = vmatprep.mubr.f32.mxu1 %v5015_v45 }
 0x508   :  { %3434 = vmatpush1.bf16.msra.mxu0 %v4171_v22  ;;  %3466 = vmatpush1.bf16.msra.mxu1 %v4175_v26 }
 0x509   :  { %3436 = vmatprep.subr.bf16.mxu0 %v4177_v27  ;;  %3468 = vmatprep.subr.bf16.mxu1 %v4179_v31 }
 0x50c   :  { %3438 = vmatpush1.bf16.msra.mxu0 %v4182_v35  ;;  %3470 = vmatpush1.bf16.msra.mxu1 %v4186_v39 }
 0x50d   :  { %3440 = vmatprep.subr.bf16.mxu0 %v4188_v40  ;;  %3472 = vmatprep.subr.bf16.mxu1 %v5083_v51 }
 0x510   :  { %3442 = vmatpush1.bf16.msra.mxu0 %v5084_v57  ;;  %3474 = vmatpush1.bf16.msra.mxu1 %v5085_v5 }
 0x511   :  { %3444 = vmatprep.subr.bf16.mxu0 %v5086_v16  ;;  %3476 = vmatprep.subr.bf16.mxu1 %v5087_v63  ;;  %v5104_v63 = vld [vmem:[#allocation45_spill] sm:$0xff] }
 0x514   :  { %3446 = vmatpush1.bf16.msra.mxu0 %v5088_v44  ;;  %3478 = vmatpush1.bf16.msra.mxu1 %v5089_v2  ;;  %v5099_v44 = vld [vmem:[#allocation30_spill] sm:$0xff]  ;;  %v5100_v2 = vld [vmem:[#allocation31_spill] sm:$0xff] }
 0x515   :  { %3448 = vmatprep.subr.bf16.mxu0 %v5090_v53  ;;  %3480 = vmatprep.subr.bf16.mxu1 %v5091_v30  ;;  %v5101_v53 = vld [vmem:[#allocation32_spill] sm:$0xff]  ;;  %v5102_v30 = vld [vmem:[#allocation33_spill] sm:$0xff] }
 0x518   :  { %3450 = vmatpush1.bf16.msra.mxu0 %v5092_v43  ;;  %3482 = vmatpush1.bf16.msra.mxu1 %v5093_v34  ;;  %v5103_v43 = vld [vmem:[#allocation34_spill] sm:$0xff] }
 0x519   :  { %3452 = vmatprep.subr.bf16.mxu0 %v5094_v24  ;;  %3484 = vmatprep.subr.bf16.mxu1 %v5095_v52 }
 0x51c   :  { %3454 = vmatpush1.bf16.msra.mxu0 %v5096_v1  ;;  %3486 = vmatpush1.bf16.msra.mxu1 %v5097_v37 }
 0x51d   :  { %3456 = vmatprep.subr.bf16.mxu0 %v5098_v7  ;;  %3488 = vmatprep.subr.bf16.mxu1 %v5099_v44 }
 0x520   :  { %3458 = vmatpush1.bf16.msra.mxu0 %v5100_v2  ;;  %3490 = vmatpush1.bf16.msra.mxu1 %v5101_v53 }
 0x521   :  { %3492 = vmatprep.subr.bf16.mxu0 %v5102_v30  ;;  %3524 = vmatprep.subr.bf16.mxu1 %v5103_v43 }
 0x5d6   :  { %v1689_v34 = vpop.f32.mrb[8].mxu0  ;;  %v1760_v24 = vpop.f32.mrb[8].mxu1 }
 0x5d7   :  { %v1765_v52 = vadd.f32 %v1689_v34, %v5104_v63  ;;  %v1691_v16 = vpop.f32.mrb[9].mxu0  ;;  %v1762_v1 = vpop.f32.mrb[9].mxu1  ;;  %v1767_v53 = vadd.f32 %v1760_v24, %v4399_v28  ;;  %v5110_v24 = vld [vmem:[#allocation19_spill] sm:$0xff] }
 0x5d8   :  { %v1766_v37 = vadd.f32 %v1691_v16, %v4392_v29  ;;  %v1768_v2 = vadd.f32 %v1762_v1, %v4396_v36 }
 0x5d9   :  { %v2775_v5 = vmul.f32 -1.442695, %v1765_v52 }
 0x5da   :  { %v2776_v7 = vmul.f32 -1.442695, %v1766_v37  ;;  %v2777_v44 = vmul.f32 -1.442695, %v1768_v2 }
 0x5db   :  { %3916 = vpow2.f32 %v2775_v5 }
 0x5dc   :  { %3918 = vpow2.f32 %v2776_v7 }
 0x5dd   :  { %3920 = vpow2.f32 %v2777_v44 }
 0x5de   :  { %3922 = vtanh.f32 %v1767_v53  ;;  %v5108_v53 = vld [vmem:[#allocation17_spill] sm:$0xff] }
 0x5e5   :  { %v3917_v30 = vpop.eup %3916 }
 0x5e6   :  { %v3919_v57 = vpop.eup %3918  ;;  %v1772_v43 = vadd.f32 1.0, %v3917_v30 }
 0x5e7   :  { %v1778_v51 = vadd.f32 1.0, %v3919_v57  ;;  %v3921_v34 = vpop.eup %3920  ;;  %v5106_v57 = vld [vmem:[#allocation15_spill] sm:$0xff] }
 0x5e8   :  { %3924 = vrcp.f32 %v1772_v43  ;;  %v3923_v63 = vpop.eup %3922  ;;  %v1785_v5 = vadd.f32 1.0, %v3921_v34  ;;  %v5109_v43 = vld [vmem:[#allocation18_spill] sm:$0xff]  ;;  %v5111_v34 = vld [vmem:[#allocation20_spill] sm:$0xff] }
 0x5e9   :  { %3926 = vrcp.f32 %v1778_v51  ;;  %v5105_v51 = vld [vmem:[#allocation14_spill] sm:$0xff] }
 0x5ea   :  { %3928 = vrcp.f32 %v1785_v5  ;;  %v5115_v5 = vld [vmem:[#allocation24_spill] sm:$0xff] }
 0x5f2   :  { %v3925_v16 = vpop.eup %3924 }
 0x5f3   :  { %v3927_v52 = vpop.eup %3926  ;;  %v1789_v37 = vmul.f32 %v3925_v16, %v3923_v63  ;;  %v5107_v63 = vld [vmem:[#allocation16_spill] sm:$0xff]  ;;  %v5112_v16 = vld [vmem:[#allocation21_spill] sm:$0xff] }
 0x5f4   :  { %v1788_v7 = vmul.f32 %v3927_v52, %v4630_v50  ;;  %v3929_v2 = vpop.eup %3928  ;;  %v1796_v50 = vld [vmem:[#allocation4 + $0x28] sm:$0xff]  ;;  %v5113_v52 = vld [vmem:[#allocation22_spill] sm:$0xff] }
 0x5f6   :  { %v4706_v1 = vadd.f32 %v1789_v37, %v1788_v7  ;;  %v5114_v37 = vld [vmem:[#allocation23_spill] sm:$0xff]  ;;  %v5116_v7 = vld [vmem:[#allocation25_spill] sm:$0xff] }
 0x5f8   :  { %3930 = vtanh.f32 %v4706_v1 }
 0x602   :  { %v3931_v30 = vpop.eup %3930 }
 0x603   :  { %v1792_v44 = vmul.f32 %v3931_v30, %v3929_v2  ;;  %v5117_v2 = vld [vmem:[#allocation26_spill] sm:$0xff]  ;;  %v5118_v30 = vld [vmem:[#allocation27_spill] sm:$0xff] }
 0x605   :  { %1794 = vst [vmem:[#allocation10 + $0x20] sm:$0xff] %v1792_v44  ;;  %1862 = vmatmul.mubr.f32.vlgmr.msra.gmra.mrb[10].mxu0 %v1792_v44  ;;  %1933 = vmatmul.mubr.f32.vlgmr.msra.gmra.mrb[10].mxu1 %v1792_v44  ;;  %v5119_v44 = vld [vmem:[#allocation28_spill] sm:$0xff] }
 0x606   :  { %3494 = vmatpush1.bf16.msra.mxu0 %v4254_v10  ;;  %3526 = vmatpush1.bf16.msra.mxu1 %v4258_v11 }
 0x607   :  { %3496 = vmatprep.subr.bf16.mxu0 %v4260_v12  ;;  %3528 = vmatprep.subr.bf16.mxu1 %v4263_v23 }
 0x608   :  { %2003 = vmatprep.mubr.f32.mxu0 %v5015_v45  ;;  %2074 = vmatprep.mubr.f32.mxu1 %v5015_v45 }
 0x60a   :  { %3498 = vmatpush1.bf16.msra.mxu0 %v4268_v33  ;;  %3530 = vmatpush1.bf16.msra.mxu1 %v4272_v38 }
 0x60b   :  { %3500 = vmatprep.subr.bf16.mxu0 %v4274_v41  ;;  %3532 = vmatprep.subr.bf16.mxu1 %v4277_v47 }
 0x60e   :  { %3502 = vmatpush1.bf16.msra.mxu0 %v4282_v61  ;;  %3534 = vmatpush1.bf16.msra.mxu1 %v5017_v19 }
 0x60f   :  { %3504 = vmatprep.subr.bf16.mxu0 %v5018_v20  ;;  %3536 = vmatprep.subr.bf16.mxu1 %v5019_v25 }
 0x612   :  { %3506 = vmatpush1.bf16.msra.mxu0 %v5020_v32  ;;  %3538 = vmatpush1.bf16.msra.mxu1 %v5021_v48 }
 0x613   :  { %3508 = vmatprep.subr.bf16.mxu0 %v5022_v55  ;;  %3540 = vmatprep.subr.bf16.mxu1 %v5023_v54 }
 0x616   :  { %3510 = vmatpush1.bf16.msra.mxu0 %v5024_v60  ;;  %3542 = vmatpush1.bf16.msra.mxu1 %v5025_v62 }
 0x617   :  { %3512 = vmatprep.subr.bf16.mxu0 %v4312_v21  ;;  %3544 = vmatprep.subr.bf16.mxu1 %v5026_v59 }
 0x61a   :  { %3514 = vmatpush1.bf16.msra.mxu0 %v4318_v42  ;;  %3546 = vmatpush1.bf16.msra.mxu1 %v4322_v0 }
 0x61b   :  { %3516 = vmatprep.subr.bf16.mxu0 %v4324_v49  ;;  %3548 = vmatprep.subr.bf16.mxu1 %v4327_v6 }
 0x61e   :  { %3518 = vmatpush1.bf16.msra.mxu0 %v4330_v14  ;;  %3550 = vmatpush1.bf16.msra.mxu1 %v4334_v3 }
 0x61f   :  { %3520 = vmatprep.subr.bf16.mxu0 %v4336_v15  ;;  %3552 = vmatprep.subr.bf16.mxu1 %v4339_v46 }
 0x622   :  { %3522 = vmatpush1.bf16.msra.mxu0 %v4342_v58  ;;  %3554 = vmatpush1.bf16.msra.mxu1 %v4346_v56 }
 0x623   :  { %3556 = vmatprep.subr.bf16.mxu0 %v4155_v4  ;;  %3588 = vmatprep.subr.bf16.mxu1 %v4157_v8 }
 0x625   :  { %2004 = vmatmul.mubr.f32.vlgmr.msra.gmra.mrb[10].mxu0 %v1796_v50  ;;  %2075 = vmatmul.mubr.f32.vlgmr.msra.gmra.mrb[10].mxu1 %v1796_v50  ;;  %v5120_v50 = vld [vmem:[#allocation29_spill] sm:$0xff] }
 0x626   :  { %3558 = vmatpush1.bf16.msra.mxu0 %v4159_v9  ;;  %3590 = vmatpush1.bf16.msra.mxu1 %v4162_v13 }
 0x627   :  { %3560 = vmatprep.subr.bf16.mxu0 %v4166_v17  ;;  %3592 = vmatprep.subr.bf16.mxu1 %v4168_v18 }
 0x628   :  { %2177 = vmatprep.mubr.f32.mxu0 %v5015_v45  ;;  %2248 = vmatprep.mubr.f32.mxu1 %v5015_v45 }
 0x62a   :  { %3562 = vmatpush1.bf16.msra.mxu0 %v4171_v22  ;;  %3594 = vmatpush1.bf16.msra.mxu1 %v4175_v26 }
 0x62b   :  { %3564 = vmatprep.subr.bf16.mxu0 %v4177_v27  ;;  %3596 = vmatprep.subr.bf16.mxu1 %v4179_v31 }
 0x62e   :  { %3566 = vmatpush1.bf16.msra.mxu0 %v4182_v35  ;;  %3598 = vmatpush1.bf16.msra.mxu1 %v4186_v39 }
 0x62f   :  { %3568 = vmatprep.subr.bf16.mxu0 %v4188_v40  ;;  %3600 = vmatprep.subr.bf16.mxu1 %v5105_v51 }
 0x632   :  { %3570 = vmatpush1.bf16.msra.mxu0 %v5106_v57  ;;  %3602 = vmatpush1.bf16.msra.mxu1 %v5107_v63 }
 0x633   :  { %3572 = vmatprep.subr.bf16.mxu0 %v5108_v53  ;;  %3604 = vmatprep.subr.bf16.mxu1 %v5109_v43  ;;  %v5126_v43 = vld [vmem:[#allocation45_spill] sm:$0xff] }
 0x636   :  { %3574 = vmatpush1.bf16.msra.mxu0 %v5110_v24  ;;  %3606 = vmatpush1.bf16.msra.mxu1 %v5111_v34  ;;  %v5121_v24 = vld [vmem:[#allocation30_spill] sm:$0xff]  ;;  %v5122_v34 = vld [vmem:[#allocation31_spill] sm:$0xff] }
 0x637   :  { %3576 = vmatprep.subr.bf16.mxu0 %v5112_v16  ;;  %3608 = vmatprep.subr.bf16.mxu1 %v5113_v52  ;;  %v5123_v16 = vld [vmem:[#allocation32_spill] sm:$0xff]  ;;  %v5124_v52 = vld [vmem:[#allocation33_spill] sm:$0xff] }
 0x63a   :  { %3578 = vmatpush1.bf16.msra.mxu0 %v5114_v37  ;;  %3610 = vmatpush1.bf16.msra.mxu1 %v5115_v5  ;;  %v5125_v37 = vld [vmem:[#allocation34_spill] sm:$0xff] }
 0x63b   :  { %3580 = vmatprep.subr.bf16.mxu0 %v5116_v7  ;;  %3612 = vmatprep.subr.bf16.mxu1 %v5117_v2 }
 0x63e   :  { %3582 = vmatpush1.bf16.msra.mxu0 %v5118_v30  ;;  %3614 = vmatpush1.bf16.msra.mxu1 %v5119_v44 }
 0x63f   :  { %3584 = vmatprep.subr.bf16.mxu0 %v5120_v50  ;;  %3616 = vmatprep.subr.bf16.mxu1 %v5121_v24 }
 0x642   :  { %3586 = vmatpush1.bf16.msra.mxu0 %v5122_v34  ;;  %3618 = vmatpush1.bf16.msra.mxu1 %v5123_v16 }
 0x643   :  { %3620 = vmatprep.subr.bf16.mxu0 %v5124_v52  ;;  %3652 = vmatprep.subr.bf16.mxu1 %v5125_v37 }
 0x6f8   :  { %v2005_v5 = vpop.f32.mrb[10].mxu0  ;;  %v2076_v7 = vpop.f32.mrb[10].mxu1 }
 0x6f9   :  { %v2081_v2 = vadd.f32 %v2005_v5, %v5126_v43  ;;  %v2007_v53 = vpop.f32.mrb[11].mxu0  ;;  %v2078_v30 = vpop.f32.mrb[11].mxu1  ;;  %v2083_v16 = vadd.f32 %v2076_v7, %v4399_v28  ;;  %v5145_v7 = vld [vmem:[#allocation32_spill] sm:$0xff] }
 0x6fa   :  { %v2082_v44 = vadd.f32 %v2007_v53, %v4392_v29  ;;  %v2084_v34 = vadd.f32 %v2078_v30, %v4396_v36 }
 0x6fb   :  { %v2778_v63 = vmul.f32 -1.442695, %v2081_v2 }
 0x6fc   :  { %v2779_v50 = vmul.f32 -1.442695, %v2082_v44  ;;  %v2780_v24 = vmul.f32 -1.442695, %v2084_v34 }
 0x6fd   :  { %3932 = vpow2.f32 %v2778_v63 }
 0x6fe   :  { %3934 = vpow2.f32 %v2779_v50 }
 0x6ff   :  { %3936 = vpow2.f32 %v2780_v24 }
 0x700   :  { %3938 = vtanh.f32 %v2083_v16  ;;  %v5143_v16 = vld [vmem:[#allocation30_spill] sm:$0xff] }
 0x707   :  { %v3933_v52 = vpop.eup %3932 }
 0x708   :  { %v3935_v57 = vpop.eup %3934  ;;  %v2088_v37 = vadd.f32 1.0, %v3933_v52 }
 0x709   :  { %v2094_v51 = vadd.f32 1.0, %v3935_v57  ;;  %v3937_v5 = vpop.eup %3936  ;;  %v5141_v57 = vld [vmem:[#allocation28_spill] sm:$0xff] }
 0x70a   :  { %3940 = vrcp.f32 %v2088_v37  ;;  %v3939_v43 = vpop.eup %3938  ;;  %v2101_v63 = vadd.f32 1.0, %v3937_v5  ;;  %v5144_v37 = vld [vmem:[#allocation31_spill] sm:$0xff]  ;;  %v5146_v5 = vld [vmem:[#allocation33_spill] sm:$0xff] }
 0x70b   :  { %3942 = vrcp.f32 %v2094_v51  ;;  %v5140_v51 = vld [vmem:[#allocation27_spill] sm:$0xff] }
 0x70c   :  { %3944 = vrcp.f32 %v2101_v63  ;;  %v5148_v63 = vld [vmem:[#allocation45_spill] sm:$0xff] }
 0x714   :  { %v3941_v53 = vpop.eup %3940 }
 0x715   :  { %v3943_v2 = vpop.eup %3942  ;;  %v2105_v44 = vmul.f32 %v3941_v53, %v3939_v43  ;;  %v5142_v43 = vld [vmem:[#allocation29_spill] sm:$0xff]  ;;  %v5147_v53 = vld [vmem:[#allocation34_spill] sm:$0xff] }
 0x716   :  { %v2104_v50 = vmul.f32 %v3943_v2, %v4706_v1  ;;  %v3945_v34 = vpop.eup %3944  ;;  %v2112_v1 = vld [vmem:[#allocation4 + $0x30] sm:$0xff] }
 0x718   :  { %v4782_v30 = vadd.f32 %v2105_v44, %v2104_v50 }
 0x71a   :  { %3946 = vtanh.f32 %v4782_v30 }
 0x724   :  { %v3947_v52 = vpop.eup %3946 }
 0x725   :  { %v2108_v24 = vmul.f32 %v3947_v52, %v3945_v34 }
 0x727   :  { %2110 = vst [vmem:[#allocation10 + $0x28] sm:$0xff] %v2108_v24  ;;  %2178 = vmatmul.mubr.f32.vlgmr.msra.gmra.mrb[12].mxu0 %v2108_v24  ;;  %2249 = vmatmul.mubr.f32.vlgmr.msra.gmra.mrb[12].mxu1 %v2108_v24 }
 0x728   :  { %3622 = vmatpush1.bf16.msra.mxu0 %v4254_v10  ;;  %3654 = vmatpush1.bf16.msra.mxu1 %v4258_v11 }
 0x729   :  { %3624 = vmatprep.subr.bf16.mxu0 %v4260_v12  ;;  %3656 = vmatprep.subr.bf16.mxu1 %v4263_v23 }
 0x72a   :  { %2319 = vmatprep.mubr.f32.mxu0 %v5015_v45  ;;  %2390 = vmatprep.mubr.f32.mxu1 %v5015_v45 }
 0x72c   :  { %3626 = vmatpush1.bf16.msra.mxu0 %v4268_v33  ;;  %3658 = vmatpush1.bf16.msra.mxu1 %v4272_v38 }
 0x72d   :  { %3628 = vmatprep.subr.bf16.mxu0 %v4274_v41  ;;  %3660 = vmatprep.subr.bf16.mxu1 %v4277_v47 }
 0x730   :  { %3630 = vmatpush1.bf16.msra.mxu0 %v4282_v61  ;;  %3662 = vmatpush1.bf16.msra.mxu1 %v5017_v19 }
 0x731   :  { %3632 = vmatprep.subr.bf16.mxu0 %v5018_v20  ;;  %3664 = vmatprep.subr.bf16.mxu1 %v5019_v25 }
 0x734   :  { %3634 = vmatpush1.bf16.msra.mxu0 %v5020_v32  ;;  %3666 = vmatpush1.bf16.msra.mxu1 %v5021_v48 }
 0x735   :  { %3636 = vmatprep.subr.bf16.mxu0 %v5022_v55  ;;  %3668 = vmatprep.subr.bf16.mxu1 %v5023_v54 }
 0x738   :  { %3638 = vmatpush1.bf16.msra.mxu0 %v5024_v60  ;;  %3670 = vmatpush1.bf16.msra.mxu1 %v5025_v62 }
 0x739   :  { %3640 = vmatprep.subr.bf16.mxu0 %v4312_v21  ;;  %3672 = vmatprep.subr.bf16.mxu1 %v5026_v59 }
 0x73c   :  { %3642 = vmatpush1.bf16.msra.mxu0 %v4318_v42  ;;  %3674 = vmatpush1.bf16.msra.mxu1 %v4322_v0 }
 0x73d   :  { %3644 = vmatprep.subr.bf16.mxu0 %v4324_v49  ;;  %3676 = vmatprep.subr.bf16.mxu1 %v4327_v6 }
 0x740   :  { %3646 = vmatpush1.bf16.msra.mxu0 %v4330_v14  ;;  %3678 = vmatpush1.bf16.msra.mxu1 %v4334_v3 }
 0x741   :  { %3648 = vmatprep.subr.bf16.mxu0 %v4336_v15  ;;  %3680 = vmatprep.subr.bf16.mxu1 %v4339_v46 }
 0x744   :  { %3650 = vmatpush1.bf16.msra.mxu0 %v4342_v58  ;;  %3682 = vmatpush1.bf16.msra.mxu1 %v4346_v56 }
 0x745   :  { %3684 = vmatprep.subr.bf16.mxu0 %v4155_v4  ;;  %3716 = vmatprep.subr.bf16.mxu1 %v4157_v8  ;;  %v5127_v4 = vld [vmem:[#allocation14_spill] sm:$0xff]  ;;  %v5128_v8 = vld [vmem:[#allocation15_spill] sm:$0xff] }
 0x747   :  { %2320 = vmatmul.mubr.f32.vlgmr.msra.gmra.mrb[12].mxu0 %v2112_v1  ;;  %2391 = vmatmul.mubr.f32.vlgmr.msra.gmra.mrb[12].mxu1 %v2112_v1 }
 0x748   :  { %3686 = vmatpush1.bf16.msra.mxu0 %v4159_v9  ;;  %3718 = vmatpush1.bf16.msra.mxu1 %v4162_v13  ;;  %v5129_v9 = vld [vmem:[#allocation16_spill] sm:$0xff]  ;;  %v5130_v13 = vld [vmem:[#allocation17_spill] sm:$0xff] }
 0x749   :  { %3688 = vmatprep.subr.bf16.mxu0 %v4166_v17  ;;  %3720 = vmatprep.subr.bf16.mxu1 %v4168_v18  ;;  %v5131_v17 = vld [vmem:[#allocation18_spill] sm:$0xff]  ;;  %v5132_v18 = vld [vmem:[#allocation19_spill] sm:$0xff] }
 0x74a   :  { %2493 = vmatprep.mubr.f32.mxu0 %v5015_v45  ;;  %2564 = vmatprep.mubr.f32.mxu1 %v5015_v45 }
 0x74c   :  { %3690 = vmatpush1.bf16.msra.mxu0 %v4171_v22  ;;  %3722 = vmatpush1.bf16.msra.mxu1 %v4175_v26  ;;  %v5133_v22 = vld [vmem:[#allocation20_spill] sm:$0xff]  ;;  %v5134_v26 = vld [vmem:[#allocation21_spill] sm:$0xff] }
 0x74d   :  { %3692 = vmatprep.subr.bf16.mxu0 %v4177_v27  ;;  %3724 = vmatprep.subr.bf16.mxu1 %v4179_v31  ;;  %v5135_v27 = vld [vmem:[#allocation22_spill] sm:$0xff]  ;;  %v5136_v31 = vld [vmem:[#allocation23_spill] sm:$0xff] }
 0x750   :  { %3694 = vmatpush1.bf16.msra.mxu0 %v4182_v35  ;;  %3726 = vmatpush1.bf16.msra.mxu1 %v4186_v39  ;;  %v5137_v35 = vld [vmem:[#allocation24_spill] sm:$0xff]  ;;  %v5138_v39 = vld [vmem:[#allocation25_spill] sm:$0xff] }
 0x751   :  { %3696 = vmatprep.subr.bf16.mxu0 %v4188_v40  ;;  %3728 = vmatprep.subr.bf16.mxu1 %v5127_v4  ;;  %v5139_v40 = vld [vmem:[#allocation26_spill] sm:$0xff] }
 0x754   :  { %3698 = vmatpush1.bf16.msra.mxu0 %v5128_v8  ;;  %3730 = vmatpush1.bf16.msra.mxu1 %v5129_v9 }
 0x755   :  { %3700 = vmatprep.subr.bf16.mxu0 %v5130_v13  ;;  %3732 = vmatprep.subr.bf16.mxu1 %v5131_v17 }
 0x758   :  { %3702 = vmatpush1.bf16.msra.mxu0 %v5132_v18  ;;  %3734 = vmatpush1.bf16.msra.mxu1 %v5133_v22 }
 0x759   :  { %3704 = vmatprep.subr.bf16.mxu0 %v5134_v26  ;;  %3736 = vmatprep.subr.bf16.mxu1 %v5135_v27 }
 0x75c   :  { %3706 = vmatpush1.bf16.msra.mxu0 %v5136_v31  ;;  %3738 = vmatpush1.bf16.msra.mxu1 %v5137_v35 }
 0x75d   :  { %3708 = vmatprep.subr.bf16.mxu0 %v5138_v39  ;;  %3740 = vmatprep.subr.bf16.mxu1 %v5139_v40 }
 0x760   :  { %3710 = vmatpush1.bf16.msra.mxu0 %v5140_v51  ;;  %3742 = vmatpush1.bf16.msra.mxu1 %v5141_v57 }
 0x761   :  { %3712 = vmatprep.subr.bf16.mxu0 %v5142_v43  ;;  %3744 = vmatprep.subr.bf16.mxu1 %v5143_v16 }
 0x764   :  { %3714 = vmatpush1.bf16.msra.mxu0 %v5144_v37  ;;  %3746 = vmatpush1.bf16.msra.mxu1 %v5145_v7 }
 0x765   :  { %3748 = vmatprep.subr.bf16.mxu0 %v5146_v5  ;;  %3780 = vmatprep.subr.bf16.mxu1 %v5147_v53 }
 0x81a   :  { %v2321_v2 = vpop.f32.mrb[12].mxu0  ;;  %v2392_v44 = vpop.f32.mrb[12].mxu1 }
 0x81b   :  { %v2397_v50 = vadd.f32 %v2321_v2, %v5148_v63  ;;  %v2323_v34 = vpop.f32.mrb[13].mxu0  ;;  %v2394_v52 = vpop.f32.mrb[13].mxu1  ;;  %v2399_v13 = vadd.f32 %v2392_v44, %v4399_v28 }
 0x81c   :  { %v2398_v24 = vadd.f32 %v2323_v34, %v4392_v29  ;;  %v2400_v8 = vadd.f32 %v2394_v52, %v4396_v36 }
 0x81d   :  { %v2781_v1 = vmul.f32 -1.442695, %v2397_v50 }
 0x81e   :  { %v2782_v4 = vmul.f32 -1.442695, %v2398_v24  ;;  %v2783_v9 = vmul.f32 -1.442695, %v2400_v8 }
 0x81f   :  { %3948 = vpow2.f32 %v2781_v1 }
 0x820   :  { %3950 = vpow2.f32 %v2782_v4 }
 0x821   :  { %3952 = vpow2.f32 %v2783_v9 }
 0x822   :  { %3954 = vtanh.f32 %v2399_v13 }
 0x829   :  { %v3949_v17 = vpop.eup %3948 }
 0x82a   :  { %v3951_v18 = vpop.eup %3950  ;;  %v2404_v22 = vadd.f32 1.0, %v3949_v17 }
 0x82b   :  { %v2410_v26 = vadd.f32 1.0, %v3951_v18  ;;  %v3953_v27 = vpop.eup %3952 }
 0x82c   :  { %3956 = vrcp.f32 %v2404_v22  ;;  %v3955_v31 = vpop.eup %3954  ;;  %v2417_v51 = vadd.f32 1.0, %v3953_v27 }
 0x82d   :  { %3958 = vrcp.f32 %v2410_v26 }
 0x82e   :  { %3960 = vrcp.f32 %v2417_v51 }
 0x836   :  { %v3957_v35 = vpop.eup %3956 }
 0x837   :  { %v3959_v39 = vpop.eup %3958  ;;  %v2421_v40 = vmul.f32 %v3957_v35, %v3955_v31 }
 0x838   :  { %v2420_v57 = vmul.f32 %v3959_v39, %v4782_v30  ;;  %v3961_v16 = vpop.eup %3960 }
 0x83a   :  { %v4858_v43 = vadd.f32 %v2421_v40, %v2420_v57 }
 0x83c   :  { %3962 = vtanh.f32 %v4858_v43 }
 0x846   :  { %v3963_v37 = vpop.eup %3962 }
 0x847   :  { %v2424_v7 = vmul.f32 %v3963_v37, %v3961_v16 }
 0x849   :  { %2426 = vst [vmem:[#allocation10 + $0x30] sm:$0xff] %v2424_v7  ;;  %2494 = vmatmul.mubr.f32.vlgmr.msra.gmra.mrb[14].mxu0 %v2424_v7  ;;  %2565 = vmatmul.mubr.f32.vlgmr.msra.gmra.mrb[14].mxu1 %v2424_v7 }
 0x84a   :  { %3750 = vmatpush1.bf16.msra.mxu0 %v4254_v10  ;;  %3782 = vmatpush1.bf16.msra.mxu1 %v4258_v11  ;;  %v2428_v10 = vld [vmem:[#allocation4 + $0x38] sm:$0xff] }
 0x84b   :  { %3752 = vmatprep.subr.bf16.mxu0 %v4260_v12  ;;  %3784 = vmatprep.subr.bf16.mxu1 %v4263_v23 }
 0x84c   :  { %2635 = vmatprep.mubr.f32.mxu0 %v5015_v45  ;;  %2706 = vmatprep.mubr.f32.mxu1 %v5015_v45 }
 0x84e   :  { %3754 = vmatpush1.bf16.msra.mxu0 %v4268_v33  ;;  %3786 = vmatpush1.bf16.msra.mxu1 %v4272_v38 }
 0x84f   :  { %3756 = vmatprep.subr.bf16.mxu0 %v4274_v41  ;;  %3788 = vmatprep.subr.bf16.mxu1 %v4277_v47 }
 0x852   :  { %3758 = vmatpush1.bf16.msra.mxu0 %v4282_v61  ;;  %3790 = vmatpush1.bf16.msra.mxu1 %v5017_v19 }
 0x853   :  { %3760 = vmatprep.subr.bf16.mxu0 %v5018_v20  ;;  %3792 = vmatprep.subr.bf16.mxu1 %v5019_v25 }
 0x856   :  { %3762 = vmatpush1.bf16.msra.mxu0 %v5020_v32  ;;  %3794 = vmatpush1.bf16.msra.mxu1 %v5021_v48 }
 0x857   :  { %3764 = vmatprep.subr.bf16.mxu0 %v5022_v55  ;;  %3796 = vmatprep.subr.bf16.mxu1 %v5023_v54 }
 0x85a   :  { %3766 = vmatpush1.bf16.msra.mxu0 %v5024_v60  ;;  %3798 = vmatpush1.bf16.msra.mxu1 %v5025_v62 }
 0x85b   :  { %3768 = vmatprep.subr.bf16.mxu0 %v4312_v21  ;;  %3800 = vmatprep.subr.bf16.mxu1 %v5026_v59 }
 0x85e   :  { %3770 = vmatpush1.bf16.msra.mxu0 %v4318_v42  ;;  %3802 = vmatpush1.bf16.msra.mxu1 %v4322_v0 }
 0x85f   :  { %3772 = vmatprep.subr.bf16.mxu0 %v4324_v49  ;;  %3804 = vmatprep.subr.bf16.mxu1 %v4327_v6 }
 0x862   :  { %3774 = vmatpush1.bf16.msra.mxu0 %v4330_v14  ;;  %3806 = vmatpush1.bf16.msra.mxu1 %v4334_v3 }
 0x863   :  { %3776 = vmatprep.subr.bf16.mxu0 %v4336_v15  ;;  %3808 = vmatprep.subr.bf16.mxu1 %v4339_v46 }
 0x866   :  { %3778 = vmatpush1.bf16.msra.mxu0 %v4342_v58  ;;  %3810 = vmatpush1.bf16.msra.mxu1 %v4346_v56 }
 0x869   :  { %2636 = vmatmul.mubr.f32.vlgmr.msra.gmra.mrb[14].mxu0 %v2428_v10  ;;  %2707 = vmatmul.mubr.f32.vlgmr.msra.gmra.mrb[14].mxu1 %v2428_v10 }
 0x93c   :  { %v2637_v11 = vpop.f32.mrb[14].mxu0  ;;  %v2708_v12 = vpop.f32.mrb[14].mxu1 }
 0x93d   :  { %v2713_v23 = vadd.f32 %v2637_v11, %v5148_v63  ;;  %v2639_v33 = vpop.f32.mrb[15].mxu0  ;;  %v2710_v38 = vpop.f32.mrb[15].mxu1  ;;  %v2715_v21 = vadd.f32 %v2708_v12, %v4399_v28 }
 0x93e   :  { %v2714_v41 = vadd.f32 %v2639_v33, %v4392_v29  ;;  %v2716_v42 = vadd.f32 %v2710_v38, %v4396_v36 }
 0x93f   :  { %v2784_v47 = vmul.f32 -1.442695, %v2713_v23 }
 0x940   :  { %v2785_v61 = vmul.f32 -1.442695, %v2714_v41  ;;  %v2786_v14 = vmul.f32 -1.442695, %v2716_v42 }
 0x941   :  { %3964 = vpow2.f32 %v2784_v47 }
 0x942   :  { %3966 = vpow2.f32 %v2785_v61 }
 0x943   :  { %3968 = vpow2.f32 %v2786_v14 }
 0x944   :  { %3970 = vtanh.f32 %v2715_v21 }
 0x94b   :  { %v3965_v0 = vpop.eup %3964 }
 0x94c   :  { %v3967_v49 = vpop.eup %3966  ;;  %v2720_v6 = vadd.f32 1.0, %v3965_v0 }
 0x94d   :  { %v2726_v3 = vadd.f32 1.0, %v3967_v49  ;;  %v3969_v15 = vpop.eup %3968 }
 0x94e   :  { %3972 = vrcp.f32 %v2720_v6  ;;  %v3971_v46 = vpop.eup %3970  ;;  %v2733_v29 = vadd.f32 1.0, %v3969_v15 }
 0x94f   :  { %3974 = vrcp.f32 %v2726_v3 }
 0x950   :  { %3976 = vrcp.f32 %v2733_v29 }
 0x958   :  { %v3973_v58 = vpop.eup %3972 }
 0x959   :  { %v3975_v56 = vpop.eup %3974  ;;  %v2737_v45 = vmul.f32 %v3973_v58, %v3971_v46 }
 0x95a   :  { %v2736_v19 = vmul.f32 %v3975_v56, %v4858_v43  ;;  %v3977_v28 = vpop.eup %3976 }
 0x95c   :  { %v2738_v36 = vadd.f32 %v2737_v45, %v2736_v19 }
 0x95e   :  { %3978 = vtanh.f32 %v2738_v36 }
 0x968   :  { %v3979_v20 = vpop.eup %3978 }
 0x969   :  { %v2740_v25 = vmul.f32 %v3979_v20, %v3977_v28 }
 0x96b   :  { %2742 = vst [vmem:[#allocation10 + $0x38] sm:$0xff] %v2740_v25 }
 0x96c   :  { %4057 = shalt.err (!%p4054_p0)
}
 0x96d   :  { %s4058_s6 = scalar_lea.hbm %s4917_s4, 1024 }
 0x96e   :  { %p4059_p1 = scmp.ne.s32.totalorder %s4917_s4, %s4058_s6  ;;  %p4062_p2 = scmp.lt.u32.totalorder %s4058_s6, %s4917_s4 }
 0x970   :  { %p4064_p3 = pnand %p4062_p2, %p4059_p1 }
 0x972   :  { %4067 = shalt.err (!%p4064_p3)
}
 0x973   :  { %2756 = dma.vmem_to_hbm [thread:$0]  %s2751_s26, 1024, %s4917_s4, [#allocation6], %s4078_s1, %s4078_s1, %s4079_s13  }
 0x974   :  { %4072 = dma.done.wait [#allocation6], 1024  }
 0x975   :  { %4073 = vsyncadd [#allocation6], 4294966272 }
 0x976   :  { %2760 = vsyncpa [#allocation5], 1 }
 0x977   :  { %2761 = vsyncpa [#allocation8], 1 }
 0x978   :  { %2762 = vsyncpa [#allocation6], 1 }

</bundles_post_ra>
